<compile_context>
chip_gen: v7x
topology: tpu7x:2x2x1
jax: 0.10.0
libtpu: 0.0.40
codegen_flags: <defaults>
</compile_context>

<pallas_src>
import numpy as np
import jax
import jax.numpy as jnp
from jax.experimental import pallas as pl
from jax.experimental.pallas import tpu as pltpu

SQRT_HALF = np.float32(np.sqrt(0.5))
BN_EPS = np.float32(1e-5)

# 48 MiB scoped VMEM: safe on every generation (v7x physical is 64 MiB/TC).
_VMEM_LIMIT_BYTES = 48 * 1024 * 1024


def _compiler_params():
    return pltpu.CompilerParams(dimension_semantics=("parallel",),
                                vmem_limit_bytes=_VMEM_LIMIT_BYTES)


# ----------------------------- kernel pieces ------------------------------- #

def _conv_glu(xp_bf, wa_ref, wg_ref, ba_ref, bg_ref, T):
    """k-tap gated conv on a padded (Tp, C) bf16 value -> (T, C) f32 GLU."""
    k = wa_ref.shape[0]
    acc_a = jnp.dot(xp_bf[0:T, :], wa_ref[0], preferred_element_type=jnp.float32)
    acc_g = jnp.dot(xp_bf[0:T, :], wg_ref[0], preferred_element_type=jnp.float32)
    for j in range(1, k):                       # static unroll, k is small
        xj = xp_bf[j:j + T, :]
        acc_a = acc_a + jnp.dot(xj, wa_ref[j], preferred_element_type=jnp.float32)
        acc_g = acc_g + jnp.dot(xj, wg_ref[j], preferred_element_type=jnp.float32)
    acc_a = acc_a + ba_ref[...]
    acc_g = acc_g + bg_ref[...]
    # exact sigmoid (exp lives on the EUP slot); matches the pure-JAX reference
    return acc_a * (1.0 / (1.0 + jnp.exp(-acc_g)))


def _emit_glu_and_stats(glu_f32, glu_ref, ssum_ref, ssq_ref):
    glu_bf = glu_f32.astype(glu_ref.dtype)
    glu_ref[0] = glu_bf
    gf = glu_bf.astype(jnp.float32)            # stats on exactly what is read back
    ssum_ref[...] = jnp.sum(gf, axis=0, keepdims=True)[None]
    ssq_ref[...] = jnp.sum(gf * gf, axis=0, keepdims=True)[None]


def _pad_conv_glu_emit(h_f32, left, wa_ref, wg_ref, ba_ref, bg_ref,
                       xpad_ref, glu_ref, ssum_ref, ssq_ref):
    """Zero-pad `h_f32` into the (Tp, C) f32 scratch, run the gated conv and
    write the GLU tile + partial BN statistics."""
    T = glu_ref.shape[1]
    xpad_ref[...] = jnp.zeros_like(xpad_ref)
    xpad_ref[left:left + T, :] = h_f32
    xp_bf = xpad_ref[...].astype(jnp.bfloat16)
    glu = _conv_glu(xp_bf, wa_ref, wg_ref, ba_ref, bg_ref, T)
    _emit_glu_and_stats(glu, glu_ref, ssum_ref, ssq_ref)


def _make_first_layer_kernel(pad):
    """Layer 0: gated conv + GLU + BN partial stats straight from the raw input."""
    left = pad[0]

    def kernel(x_ref, wa_ref, wg_ref, ba_ref, bg_ref,
               glu_ref, ssum_ref, ssq_ref, xpad_ref):
        _pad_conv_glu_emit(x_ref[0].astype(jnp.float32), left,
                           wa_ref, wg_ref, ba_ref, bg_ref,
                           xpad_ref, glu_ref, ssum_ref, ssq_ref)
    return kernel


def _make_fused_kernel(pad, has_res):
    """Previous layer's epilogue (folded BN + ReLU + sqrt(0.5) [+ residual])
    fused as the prologue of this layer's gated conv."""
    left = pad[0]

    def _body(glu_prev_ref, scale_ref, shift_ref, res_ref, wa_ref, wg_ref,
              ba_ref, bg_ref, x_ref, glu_ref, ssum_ref, ssq_ref, xpad_ref):
        h = glu_prev_ref[0].astype(jnp.float32) * scale_ref[...] + shift_ref[...]
        h = jnp.maximum(h, 0.0) * SQRT_HALF
        if res_ref is not None:
            h = h + res_ref[0].astype(jnp.float32)
        x_ref[0] = h.astype(x_ref.dtype)        # this layer's input / next residual
        _pad_conv_glu_emit(h, left, wa_ref, wg_ref, ba_ref, bg_ref,
                           xpad_ref, glu_ref, ssum_ref, ssq_ref)

    if has_res:
        def kernel(glu_prev_ref, scale_ref, shift_ref, res_ref, wa_ref, wg_ref,
                   ba_ref, bg_ref, x_ref, glu_ref, ssum_ref, ssq_ref, xpad_ref):
            _body(glu_prev_ref, scale_ref, shift_ref, res_ref, wa_ref, wg_ref,
                  ba_ref, bg_ref, x_ref, glu_ref, ssum_ref, ssq_ref, xpad_ref)
    else:
        def kernel(glu_prev_ref, scale_ref, shift_ref, wa_ref, wg_ref,
                   ba_ref, bg_ref, x_ref, glu_ref, ssum_ref, ssq_ref, xpad_ref):
            _body(glu_prev_ref, scale_ref, shift_ref, None, wa_ref, wg_ref,
                  ba_ref, bg_ref, x_ref, glu_ref, ssum_ref, ssq_ref, xpad_ref)
    return kernel


def _make_epilogue_kernel(has_res):
    """Final layer's epilogue: folded BN + ReLU + sqrt(0.5) (+ residual), f32 out."""
    if has_res:
        def kernel(glu_ref, scale_ref, shift_ref, res_ref, o_ref):
            y = glu_ref[0].astype(jnp.float32) * scale_ref[...] + shift_ref[...]
            y = jnp.maximum(y, 0.0) * SQRT_HALF + res_ref[0].astype(jnp.float32)
            o_ref[0] = y.astype(o_ref.dtype)
    else:
        def kernel(glu_ref, scale_ref, shift_ref, o_ref):
            y = glu_ref[0].astype(jnp.float32) * scale_ref[...] + shift_ref[...]
            o_ref[0] = (jnp.maximum(y, 0.0) * SQRT_HALF).astype(o_ref.dtype)
    return kernel


# ------------------------------ wrappers ------------------------------------ #

def _split_params(W, b):
    """Split (k, C, 2C) weights / (2C,) bias into GLU 'a' and 'gate' halves."""
    C = W.shape[1]
    wa = W[:, :, :C].astype(jnp.bfloat16)
    wg = W[:, :, C:].astype(jnp.bfloat16)
    ba = b[:C].reshape(1, C).astype(jnp.float32)
    bg = b[C:].reshape(1, C).astype(jnp.float32)
    return wa, wg, ba, bg


def _fold_bn(ssum, ssq, gamma, beta, n_rows):
    """Fold train-mode batch statistics + affine params into scale/shift."""
    n = jnp.float32(n_rows)
    mean = jnp.sum(ssum[:, 0, :], axis=0) / n
    var = jnp.maximum(jnp.sum(ssq[:, 0, :], axis=0) / n - mean * mean, 0.0)
    inv = jax.lax.rsqrt(var + BN_EPS)
    g = gamma.reshape(-1).astype(jnp.float32)
    scale = (g * inv).reshape(1, -1)
    shift = (beta.reshape(-1).astype(jnp.float32) - mean * g * inv).reshape(1, -1)
    return scale, shift


def stacked_conv_forward(x, params, decode=False):
    """Forward pass of stackedConv (train-mode BatchNorm batch statistics)."""
    B, T, C = x.shape
    N = len(params)
    k = params[0][0].shape[0]
    if decode:
        pad = (k - 1, 0)                                   # causal left padding
    else:
        assert k % 2 == 1, "encoder 'same' padding requires odd kernel size"
        pad = ((k - 1) // 2, (k - 1) // 2)
    Tp = T + pad[0] + pad[1]
    cparams = _compiler_params()

    row_spec = pl.BlockSpec((1, T, C), lambda i: (i, 0, 0))
    stat_spec = pl.BlockSpec((1, 1, C), lambda i: (i, 0, 0))
    vec_spec = pl.BlockSpec((1, C), lambda i: (0, 0))
    w_spec = pl.BlockSpec((k, C, C), lambda i: (0, 0, 0))
    glu_shape = jax.ShapeDtypeStruct((B, T, C), jnp.bfloat16)
    stat_shape = jax.ShapeDtypeStruct((B, 1, C), jnp.float32)
    pad_scratch = pltpu.VMEM((Tp, C), jnp.float32)

    # ---- layer 0: conv + GLU + BN partial stats on the raw input ----
    W0, b0, gamma0, beta0 = params[0]
    wa, wg, ba, bg = _split_params(W0, b0)
    glu, ssum, ssq = pl.pallas_call(
        _make_first_layer_kernel(pad),
        grid=(B,),
        in_specs=[row_spec, w_spec, w_spec, vec_spec, vec_spec],
        out_specs=(row_spec, stat_spec, stat_spec),
        out_shape=(glu_shape, stat_shape, stat_shape),
        scratch_shapes=[pad_scratch],
        compiler_params=cparams,
    )(x, wa, wg, ba, bg)
    scale, shift = _fold_bn(ssum, ssq, gamma0, beta0, B * T)

    res = None   # residual for the NEXT epilogue; layer 0 adds no residual

    # ---- layers 1..N-1: fused (previous epilogue + this layer's conv) ----
    for li in range(1, N):
        Wl, bl, gammal, betal = params[li]
        wa, wg, ba, bg = _split_params(Wl, bl)
        has_res = res is not None
        in_specs = [row_spec, vec_spec, vec_spec]
        args = [glu, scale, shift]
        if has_res:
            in_specs.append(row_spec)
            args.append(res)
        in_specs += [w_spec, w_spec, vec_spec, vec_spec]
        args += [wa, wg, ba, bg]
        x_cur, glu, ssum, ssq = pl.pallas_call(
            _make_fused_kernel(pad, has_res),
            grid=(B,),
            in_specs=in_specs,
            out_specs=(row_spec, row_spec, stat_spec, stat_spec),
            out_shape=(glu_shape, glu_shape, stat_shape, stat_shape),
            scratch_shapes=[pad_scratch],
            compiler_params=cparams,
        )(*args)
        scale, shift = _fold_bn(ssum, ssq, gammal, betal, B * T)
        res = x_cur                      # this layer's input == next residual

    # ---- final epilogue: folded BN + ReLU + sqrt(0.5) (+ residual) ----
    has_res = res is not None
    in_specs = [row_spec, vec_spec, vec_spec]
    args = [glu, scale, shift]
    if has_res:
        in_specs.append(row_spec)
        args.append(res)
    out = pl.pallas_call(
        _make_epilogue_kernel(has_res),
        grid=(B,),
        in_specs=in_specs,
        out_specs=row_spec,
        out_shape=jax.ShapeDtypeStruct((B, T, C), x.dtype),
        compiler_params=cparams,
    )(*args)
    return out


def init_params(key, N, d_vector, k_size):
    params = []
    for _ in range(N):
        key, k1, k2, k3, k4 = jax.random.split(key, 5)
        # PyTorch Conv1d weight is (2C, C, k); stored here tap-major (k, C, 2C).
        W = 0.1 * jax.random.normal(k1, (k_size, d_vector, 2 * d_vector),
                                    jnp.float32)
        b = 0.1 * jax.random.normal(k2, (2 * d_vector,), jnp.float32)
        gamma = 1.0 + 0.1 * jax.random.normal(k3, (d_vector,), jnp.float32)
        beta = 0.1 * jax.random.normal(k4, (d_vector,), jnp.float32)
        params.append((W, b, gamma, beta))
    return params


# ------------------------------ reference ----------------------------------- #

def _ref_forward(x, params, decode):
    """Pure-JAX reference mirroring the kernel's mixed precision: bf16 MXU
    operands and bf16 inter-layer activations (GLU + residual), f32
    accumulation / sigmoid / BN statistics; final output in x.dtype."""
    B, T, C = x.shape
    k = params[0][0].shape[0]
    pad = (k - 1, 0) if decode else ((k - 1) // 2, (k - 1) // 2)
    n_layers = len(params)

    x_bf = x.astype(jnp.bfloat16)
    res = None
    out = None
    for li, (W, b, gamma, beta) in enumerate(params):
        wa, wg, ba, bg = _split_params(W, b)
        xp = jnp.pad(x_bf, ((0, 0), pad, (0, 0)))
        acc_a = jnp.zeros((B, T, C), jnp.float32)
        acc_g = jnp.zeros((B, T, C), jnp.float32)
        for j in range(k):
            xj = xp[:, j:j + T, :].reshape(B * T, C)
            acc_a = acc_a + jnp.dot(xj, wa[j],
                                    preferred_element_type=jnp.float32).reshape(B, T, C)
            acc_g = acc_g + jnp.dot(xj, wg[j],
                                    preferred_element_type=jnp.float32).reshape(B, T, C)
        acc_a = acc_a + ba.reshape(1, 1, C)
        acc_g = acc_g + bg.reshape(1, 1, C)
        glu = (acc_a * (1.0 / (1.0 + jnp.exp(-acc_g)))).astype(jnp.bfloat16)
        gf = glu.astype(jnp.float32)
        ssum = jnp.sum(gf, axis=1, keepdims=True)          # (B, 1, C) partials
        ssq = jnp.sum(gf * gf, axis=1, keepdims=True)
        scale, shift = _fold_bn(ssum, ssq, gamma, beta, B * T)
        h = jnp.maximum(gf * scale.reshape(1, 1, C) + shift.reshape(1, 1, C),
                        0.0) * SQRT_HALF
        if res is not None:
            h = h + res.astype(jnp.float32)
        if li + 1 < n_layers:
            x_bf = h.astype(jnp.bfloat16)                  # stored bf16 as kernel does
            res = x_bf
        else:
            out = h.astype(x.dtype)
    return out


# -------------------------------- demo --------------------------------------- #

if __name__ == "__main__":
    N_layers, d_vector, k_size = 2, 32, 3
    B, T = 2, 16

    key = jax.random.PRNGKey(0)
    kx, kp = jax.random.split(key)
    x = jax.random.normal(kx, (B, T, d_vector), jnp.float32)
    params = init_params(kp, N_layers, d_vector, k_size)

    fwd = jax.jit(stacked_conv_forward, static_argnames=("decode",))

    out_e = jax.block_until_ready(fwd(x, params, decode=False))   # 'same' padding
    out_d = jax.block_until_ready(fwd(x, params, decode=True))    # causal padding

    ref_e = _ref_forward(x, params, decode=False)
    ref_d = _ref_forward(x, params, decode=True)

    assert out_e.shape == (B, T, d_vector) and out_d.shape == (B, T, d_vector)
    # bf16 inter-layer activations in both kernel and reference -> 2e-2 tolerance
    np.testing.assert_allclose(np.asarray(out_e), np.asarray(ref_e),
                               rtol=2e-2, atol=2e-2)
    np.testing.assert_allclose(np.asarray(out_d), np.asarray(ref_d),
                               rtol=2e-2, atol=2e-2)

    # 3-layer stack exercises the fused kernel's residual (has_res=True) path.
    params3 = init_params(jax.random.PRNGKey(1), 3, d_vector, k_size)
    out3 = jax.block_until_ready(fwd(x, params3, decode=True))
    ref3 = _ref_forward(x, params3, decode=True)
    np.testing.assert_allclose(np.asarray(out3), np.asarray(ref3),
                               rtol=2e-2, atol=2e-2)

    print("KERNEL_OK")
</pallas_src>

<mosaic_0001>
module attributes {stable_mosaic.version = 11 : i64} {
  func.func @kernel(%arg0: i32, %arg1: memref<1x16x32xf32, #tpu.memory_space<vmem>>, %arg2: memref<3x32x32xbf16, #tpu.memory_space<vmem>>, %arg3: memref<3x32x32xbf16, #tpu.memory_space<vmem>>, %arg4: memref<1x32xf32, #tpu.memory_space<vmem>>, %arg5: memref<1x32xf32, #tpu.memory_space<vmem>>, %arg6: memref<1x16x32xbf16, #tpu.memory_space<vmem>>, %arg7: memref<1x1x32xf32, #tpu.memory_space<vmem>>, %arg8: memref<1x1x32xf32, #tpu.memory_space<vmem>>, %arg9: memref<18x32xf32, #tpu.memory_space<vmem>>) attributes {dimension_semantics = [#tpu.dimension_semantics<parallel>], iteration_bounds = array<i64: 2>, scalar_prefetch = 0 : i64, scratch_operands = 1 : i64, tpu.core_type = #tpu.core_type<tc>, window_params = [{transform_indices = @transform_0, window_bounds = array<i64: 1, 16, 32>}, {pipeline_mode = #tpu.pipeline_mode<synchronous>, transform_indices = @transform_1, window_bounds = array<i64: 3, 32, 32>}, {pipeline_mode = #tpu.pipeline_mode<synchronous>, transform_indices = @transform_2, window_bounds = array<i64: 3, 32, 32>}, {pipeline_mode = #tpu.pipeline_mode<synchronous>, transform_indices = @transform_3, window_bounds = array<i64: 1, 32>}, {pipeline_mode = #tpu.pipeline_mode<synchronous>, transform_indices = @transform_4, window_bounds = array<i64: 1, 32>}, {transform_indices = @transform_5, window_bounds = array<i64: 1, 16, 32>}, {transform_indices = @transform_6, window_bounds = array<i64: 1, 1, 32>}, {transform_indices = @transform_7, window_bounds = array<i64: 1, 1, 32>}]} {
    %c0 = arith.constant 0 : index
    %c0_0 = arith.constant 0 : index
    %c0_1 = arith.constant 0 : index
    %0 = vector.load %arg1[%c0, %c0_0, %c0_1] : memref<1x16x32xf32, #tpu.memory_space<vmem>>, vector<1x16x32xf32>
    %1 = vector.shape_cast %0 : vector<1x16x32xf32> to vector<16x32xf32>
    %cst = arith.constant 0.000000e+00 : f32
    %2 = vector.broadcast %cst : f32 to vector<18x32xf32>
    %c0_2 = arith.constant 0 : index
    %c0_3 = arith.constant 0 : index
    %3 = vector.load %arg9[%c0_2, %c0_3] : memref<18x32xf32, #tpu.memory_space<vmem>>, vector<18x32xf32>
    tpu.vector_store %arg9[%c0_2, %c0_3], %2 {strides = array<i32>} : memref<18x32xf32, #tpu.memory_space<vmem>>, vector<18x32xf32>,
    %c1 = arith.constant 1 : index
    %c0_4 = arith.constant 0 : index
    %4 = vector.load %arg9[%c1, %c0_4] : memref<18x32xf32, #tpu.memory_space<vmem>>, vector<16x32xf32>
    tpu.vector_store %arg9[%c1, %c0_4], %1 {strides = array<i32>} : memref<18x32xf32, #tpu.memory_space<vmem>>, vector<16x32xf32>,
    %c0_5 = arith.constant 0 : index
    %c0_6 = arith.constant 0 : index
    %5 = vector.load %arg9[%c0_5, %c0_6] : memref<18x32xf32, #tpu.memory_space<vmem>>, vector<18x32xf32>
    %6 = arith.truncf %5 : vector<18x32xf32> to vector<18x32xbf16>
    %7 = vector.extract_strided_slice %6 {offsets = [0, 0], sizes = [16, 32], strides = [1, 1]} : vector<18x32xbf16> to vector<16x32xbf16>
    %c0_7 = arith.constant 0 : index
    %c0_8 = arith.constant 0 : index
    %c0_9 = arith.constant 0 : index
    %8 = vector.load %arg2[%c0_7, %c0_8, %c0_9] : memref<3x32x32xbf16, #tpu.memory_space<vmem>>, vector<1x32x32xbf16>
    %9 = vector.shape_cast %8 : vector<1x32x32xbf16> to vector<32x32xbf16>
    %cst_10 = arith.constant dense<0.000000e+00> : vector<16x32xf32>
    %10 = tpu.matmul %7, %9, %cst_10 {dimension_numbers = #tpu.dot_dimension_numbers<[1], [0], [0], [1], [0, 0, 1, 1], [], []>} : vector<16x32xbf16>, vector<32x32xbf16>, vector<16x32xf32> -> vector<16x32xf32>
    %11 = vector.extract_strided_slice %6 {offsets = [0, 0], sizes = [16, 32], strides = [1, 1]} : vector<18x32xbf16> to vector<16x32xbf16>
    %c0_11 = arith.constant 0 : index
    %c0_12 = arith.constant 0 : index
    %c0_13 = arith.constant 0 : index
    %12 = vector.load %arg3[%c0_11, %c0_12, %c0_13] : memref<3x32x32xbf16, #tpu.memory_space<vmem>>, vector<1x32x32xbf16>
    %13 = vector.shape_cast %12 : vector<1x32x32xbf16> to vector<32x32xbf16>
    %cst_14 = arith.constant dense<0.000000e+00> : vector<16x32xf32>
    %14 = tpu.matmul %11, %13, %cst_14 {dimension_numbers = #tpu.dot_dimension_numbers<[1], [0], [0], [1], [0, 0, 1, 1], [], []>} : vector<16x32xbf16>, vector<32x32xbf16>, vector<16x32xf32> -> vector<16x32xf32>
    %15 = vector.extract_strided_slice %6 {offsets = [1, 0], sizes = [16, 32], strides = [1, 1]} : vector<18x32xbf16> to vector<16x32xbf16>
    %c1_15 = arith.constant 1 : index
    %c0_16 = arith.constant 0 : index
    %c0_17 = arith.constant 0 : index
    %16 = vector.load %arg2[%c1_15, %c0_16, %c0_17] : memref<3x32x32xbf16, #tpu.memory_space<vmem>>, vector<1x32x32xbf16>
    %17 = vector.shape_cast %16 : vector<1x32x32xbf16> to vector<32x32xbf16>
    %cst_18 = arith.constant dense<0.000000e+00> : vector<16x32xf32>
    %18 = tpu.matmul %15, %17, %cst_18 {dimension_numbers = #tpu.dot_dimension_numbers<[1], [0], [0], [1], [0, 0, 1, 1], [], []>} : vector<16x32xbf16>, vector<32x32xbf16>, vector<16x32xf32> -> vector<16x32xf32>
    %19 = arith.addf %10, %18 : vector<16x32xf32>
    %c1_19 = arith.constant 1 : index
    %c0_20 = arith.constant 0 : index
    %c0_21 = arith.constant 0 : index
    %20 = vector.load %arg3[%c1_19, %c0_20, %c0_21] : memref<3x32x32xbf16, #tpu.memory_space<vmem>>, vector<1x32x32xbf16>
    %21 = vector.shape_cast %20 : vector<1x32x32xbf16> to vector<32x32xbf16>
    %cst_22 = arith.constant dense<0.000000e+00> : vector<16x32xf32>
    %22 = tpu.matmul %15, %21, %cst_22 {dimension_numbers = #tpu.dot_dimension_numbers<[1], [0], [0], [1], [0, 0, 1, 1], [], []>} : vector<16x32xbf16>, vector<32x32xbf16>, vector<16x32xf32> -> vector<16x32xf32>
    %23 = arith.addf %14, %22 : vector<16x32xf32>
    %24 = vector.extract_strided_slice %6 {offsets = [2, 0], sizes = [16, 32], strides = [1, 1]} : vector<18x32xbf16> to vector<16x32xbf16>
    %c2 = arith.constant 2 : index
    %c0_23 = arith.constant 0 : index
    %c0_24 = arith.constant 0 : index
    %25 = vector.load %arg2[%c2, %c0_23, %c0_24] : memref<3x32x32xbf16, #tpu.memory_space<vmem>>, vector<1x32x32xbf16>
    %26 = vector.shape_cast %25 : vector<1x32x32xbf16> to vector<32x32xbf16>
    %cst_25 = arith.constant dense<0.000000e+00> : vector<16x32xf32>
    %27 = tpu.matmul %24, %26, %cst_25 {dimension_numbers = #tpu.dot_dimension_numbers<[1], [0], [0], [1], [0, 0, 1, 1], [], []>} : vector<16x32xbf16>, vector<32x32xbf16>, vector<16x32xf32> -> vector<16x32xf32>
    %28 = arith.addf %19, %27 : vector<16x32xf32>
    %c2_26 = arith.constant 2 : index
    %c0_27 = arith.constant 0 : index
    %c0_28 = arith.constant 0 : index
    %29 = vector.load %arg3[%c2_26, %c0_27, %c0_28] : memref<3x32x32xbf16, #tpu.memory_space<vmem>>, vector<1x32x32xbf16>
    %30 = vector.shape_cast %29 : vector<1x32x32xbf16> to vector<32x32xbf16>
    %cst_29 = arith.constant dense<0.000000e+00> : vector<16x32xf32>
    %31 = tpu.matmul %24, %30, %cst_29 {dimension_numbers = #tpu.dot_dimension_numbers<[1], [0], [0], [1], [0, 0, 1, 1], [], []>} : vector<16x32xbf16>, vector<32x32xbf16>, vector<16x32xf32> -> vector<16x32xf32>
    %32 = arith.addf %23, %31 : vector<16x32xf32>
    %c0_30 = arith.constant 0 : index
    %c0_31 = arith.constant 0 : index
    %33 = vector.load %arg4[%c0_30, %c0_31] : memref<1x32xf32, #tpu.memory_space<vmem>>, vector<1x32xf32>
    %34 = vector.broadcast %33 : vector<1x32xf32> to vector<16x32xf32>
    %35 = arith.addf %28, %34 : vector<16x32xf32>
    %c0_32 = arith.constant 0 : index
    %c0_33 = arith.constant 0 : index
    %36 = vector.load %arg5[%c0_32, %c0_33] : memref<1x32xf32, #tpu.memory_space<vmem>>, vector<1x32xf32>
    %37 = vector.broadcast %36 : vector<1x32xf32> to vector<16x32xf32>
    %38 = arith.addf %32, %37 : vector<16x32xf32>
    %cst_34 = arith.constant 0.000000e+00 : f32
    %39 = vector.broadcast %cst_34 : f32 to vector<16x32xf32>
    %40 = arith.subf %39, %38 : vector<16x32xf32>
    %41 = math.exp %40 : vector<16x32xf32>
    %cst_35 = arith.constant 1.000000e+00 : f32
    %42 = vector.broadcast %cst_35 : f32 to vector<16x32xf32>
    %43 = arith.addf %42, %41 : vector<16x32xf32>
    %cst_36 = arith.constant 1.000000e+00 : f32
    %44 = vector.broadcast %cst_36 : f32 to vector<16x32xf32>
    %45 = arith.divf %44, %43 : vector<16x32xf32>
    %46 = arith.mulf %35, %45 : vector<16x32xf32>
    %47 = arith.truncf %46 : vector<16x32xf32> to vector<16x32xbf16>
    %c0_37 = arith.constant 0 : index
    %c0_38 = arith.constant 0 : index
    %c0_39 = arith.constant 0 : index
    %48 = vector.load %arg6[%c0_37, %c0_38, %c0_39] : memref<1x16x32xbf16, #tpu.memory_space<vmem>>, vector<1x16x32xbf16>
    %49 = vector.shape_cast %48 : vector<1x16x32xbf16> to vector<16x32xbf16>
    %50 = vector.shape_cast %47 : vector<16x32xbf16> to vector<1x16x32xbf16>
    tpu.vector_store %arg6[%c0_37, %c0_38, %c0_39], %50 {strides = array<i32>} : memref<1x16x32xbf16, #tpu.memory_space<vmem>>, vector<1x16x32xbf16>,
    %51 = arith.extf %47 : vector<16x32xbf16> to vector<16x32xf32>
    %cst_40 = arith.constant dense<0.000000e+00> : vector<32xf32>
    %52 = vector.multi_reduction <add>, %51, %cst_40 [0] : vector<16x32xf32> to vector<32xf32>
    %53 = vector.shape_cast %52 : vector<32xf32> to vector<1x32xf32>
    %54 = vector.shape_cast %53 : vector<1x32xf32> to vector<1x1x32xf32>
    %c0_41 = arith.constant 0 : index
    %c0_42 = arith.constant 0 : index
    %c0_43 = arith.constant 0 : index
    %55 = vector.load %arg7[%c0_41, %c0_42, %c0_43] : memref<1x1x32xf32, #tpu.memory_space<vmem>>, vector<1x1x32xf32>
    tpu.vector_store %arg7[%c0_41, %c0_42, %c0_43], %54 {strides = array<i32>} : memref<1x1x32xf32, #tpu.memory_space<vmem>>, vector<1x1x32xf32>,
    %56 = arith.mulf %51, %51 : vector<16x32xf32>
    %cst_44 = arith.constant dense<0.000000e+00> : vector<32xf32>
    %57 = vector.multi_reduction <add>, %56, %cst_44 [0] : vector<16x32xf32> to vector<32xf32>
    %58 = vector.shape_cast %57 : vector<32xf32> to vector<1x32xf32>
    %59 = vector.shape_cast %58 : vector<1x32xf32> to vector<1x1x32xf32>
    %c0_45 = arith.constant 0 : index
    %c0_46 = arith.constant 0 : index
    %c0_47 = arith.constant 0 : index
    %60 = vector.load %arg8[%c0_45, %c0_46, %c0_47] : memref<1x1x32xf32, #tpu.memory_space<vmem>>, vector<1x1x32xf32>
    tpu.vector_store %arg8[%c0_45, %c0_46, %c0_47], %59 {strides = array<i32>} : memref<1x1x32xf32, #tpu.memory_space<vmem>>, vector<1x1x32xf32>,
    return
  }
  func.func @transform_0(%arg0: i32) -> (i32, i32, i32) {
    %c0_i32 = arith.constant 0 : i32
    %c0_i32_0 = arith.constant 0 : i32
    %c0_i32_1 = arith.constant 0 : i32
    return %arg0, %c0_i32, %c0_i32_0 : i32, i32, i32
  }
  func.func @transform_1(%arg0: i32) -> (i32, i32, i32) {
    %c0_i32 = arith.constant 0 : i32
    %c0_i32_0 = arith.constant 0 : i32
    %c0_i32_1 = arith.constant 0 : i32
    %c0_i32_2 = arith.constant 0 : i32
    return %c0_i32, %c0_i32_0, %c0_i32_1 : i32, i32, i32
  }
  func.func @transform_2(%arg0: i32) -> (i32, i32, i32) {
    %c0_i32 = arith.constant 0 : i32
    %c0_i32_0 = arith.constant 0 : i32
    %c0_i32_1 = arith.constant 0 : i32
    %c0_i32_2 = arith.constant 0 : i32
    return %c0_i32, %c0_i32_0, %c0_i32_1 : i32, i32, i32
  }
  func.func @transform_3(%arg0: i32) -> (i32, i32) {
    %c0_i32 = arith.constant 0 : i32
    %c0_i32_0 = arith.constant 0 : i32
    %c0_i32_1 = arith.constant 0 : i32
    return %c0_i32, %c0_i32_0 : i32, i32
  }
  func.func @transform_4(%arg0: i32) -> (i32, i32) {
    %c0_i32 = arith.constant 0 : i32
    %c0_i32_0 = arith.constant 0 : i32
    %c0_i32_1 = arith.constant 0 : i32
    return %c0_i32, %c0_i32_0 : i32, i32
  }
  func.func @transform_5(%arg0: i32) -> (i32, i32, i32) {
    %c0_i32 = arith.constant 0 : i32
    %c0_i32_0 = arith.constant 0 : i32
    %c0_i32_1 = arith.constant 0 : i32
    return %arg0, %c0_i32, %c0_i32_0 : i32, i32, i32
  }
  func.func @transform_6(%arg0: i32) -> (i32, i32, i32) {
    %c0_i32 = arith.constant 0 : i32
    %c0_i32_0 = arith.constant 0 : i32
    %c0_i32_1 = arith.constant 0 : i32
    return %arg0, %c0_i32, %c0_i32_0 : i32, i32, i32
  }
  func.func @transform_7(%arg0: i32) -> (i32, i32, i32) {
    %c0_i32 = arith.constant 0 : i32
    %c0_i32_0 = arith.constant 0 : i32
    %c0_i32_1 = arith.constant 0 : i32
    return %arg0, %c0_i32, %c0_i32_0 : i32, i32, i32
  }
}

module attributes {stable_mosaic.version = 11 : i64} {
  func.func @kernel(%arg0: i32, %arg1: memref<1x16x32xbf16, #tpu.memory_space<vmem>>, %arg2: memref<1x32xf32, #tpu.memory_space<vmem>>, %arg3: memref<1x32xf32, #tpu.memory_space<vmem>>, %arg4: memref<1x16x32xbf16, #tpu.memory_space<vmem>>, %arg5: memref<1x16x32xf32, #tpu.memory_space<vmem>>) attributes {dimension_semantics = [#tpu.dimension_semantics<parallel>], iteration_bounds = array<i64: 2>, scalar_prefetch = 0 : i64, scratch_operands = 0 : i64, tpu.core_type = #tpu.core_type<tc>, window_params = [{transform_indices = @transform_0, window_bounds = array<i64: 1, 16, 32>}, {pipeline_mode = #tpu.pipeline_mode<synchronous>, transform_indices = @transform_1, window_bounds = array<i64: 1, 32>}, {pipeline_mode = #tpu.pipeline_mode<synchronous>, transform_indices = @transform_2, window_bounds = array<i64: 1, 32>}, {transform_indices = @transform_3, window_bounds = array<i64: 1, 16, 32>}, {transform_indices = @transform_4, window_bounds = array<i64: 1, 16, 32>}]} {
    %c0 = arith.constant 0 : index
    %c0_0 = arith.constant 0 : index
    %c0_1 = arith.constant 0 : index
    %0 = vector.load %arg1[%c0, %c0_0, %c0_1] : memref<1x16x32xbf16, #tpu.memory_space<vmem>>, vector<1x16x32xbf16>
    %1 = vector.shape_cast %0 : vector<1x16x32xbf16> to vector<16x32xbf16>
    %2 = arith.extf %1 : vector<16x32xbf16> to vector<16x32xf32>
    %c0_2 = arith.constant 0 : index
    %c0_3 = arith.constant 0 : index
    %3 = vector.load %arg2[%c0_2, %c0_3] : memref<1x32xf32, #tpu.memory_space<vmem>>, vector<1x32xf32>
    %4 = vector.broadcast %3 : vector<1x32xf32> to vector<16x32xf32>
    %5 = arith.mulf %2, %4 : vector<16x32xf32>
    %c0_4 = arith.constant 0 : index
    %c0_5 = arith.constant 0 : index
    %6 = vector.load %arg3[%c0_4, %c0_5] : memref<1x32xf32, #tpu.memory_space<vmem>>, vector<1x32xf32>
    %7 = vector.broadcast %6 : vector<1x32xf32> to vector<16x32xf32>
    %8 = arith.addf %5, %7 : vector<16x32xf32>
    %cst = arith.constant 0.000000e+00 : f32
    %9 = vector.broadcast %cst : f32 to vector<16x32xf32>
    %10 = arith.maximumf %8, %9 : vector<16x32xf32>
    %cst_6 = arith.constant 0.707106769 : f32
    %11 = vector.broadcast %cst_6 : f32 to vector<16x32xf32>
    %12 = arith.mulf %10, %11 : vector<16x32xf32>
    %c0_7 = arith.constant 0 : index
    %c0_8 = arith.constant 0 : index
    %c0_9 = arith.constant 0 : index
    %13 = vector.load %arg4[%c0_7, %c0_8, %c0_9] : memref<1x16x32xbf16, #tpu.memory_space<vmem>>, vector<1x16x32xbf16>
    %14 = vector.shape_cast %13 : vector<1x16x32xbf16> to vector<16x32xbf16>
    %15 = arith.extf %14 : vector<16x32xbf16> to vector<16x32xf32>
    %16 = arith.addf %12, %15 : vector<16x32xf32>
    %c0_10 = arith.constant 0 : index
    %c0_11 = arith.constant 0 : index
    %c0_12 = arith.constant 0 : index
    %17 = vector.load %arg5[%c0_10, %c0_11, %c0_12] : memref<1x16x32xf32, #tpu.memory_space<vmem>>, vector<1x16x32xf32>
    %18 = vector.shape_cast %17 : vector<1x16x32xf32> to vector<16x32xf32>
    %19 = vector.shape_cast %16 : vector<16x32xf32> to vector<1x16x32xf32>
    tpu.vector_store %arg5[%c0_10, %c0_11, %c0_12], %19 {strides = array<i32>} : memref<1x16x32xf32, #tpu.memory_space<vmem>>, vector<1x16x32xf32>,
    return
  }
  func.func @transform_0(%arg0: i32) -> (i32, i32, i32) {
    %c0_i32 = arith.constant 0 : i32
    %c0_i32_0 = arith.constant 0 : i32
    %c0_i32_1 = arith.constant 0 : i32
    return %arg0, %c0_i32, %c0_i32_0 : i32, i32, i32
  }
  func.func @transform_1(%arg0: i32) -> (i32, i32) {
    %c0_i32 = arith.constant 0 : i32
    %c0_i32_0 = arith.constant 0 : i32
    %c0_i32_1 = arith.constant 0 : i32
    return %c0_i32, %c0_i32_0 : i32, i32
  }
  func.func @transform_2(%arg0: i32) -> (i32, i32) {
    %c0_i32 = arith.constant 0 : i32
    %c0_i32_0 = arith.constant 0 : i32
    %c0_i32_1 = arith.constant 0 : i32
    return %c0_i32, %c0_i32_0 : i32, i32
  }
  func.func @transform_3(%arg0: i32) -> (i32, i32, i32) {
    %c0_i32 = arith.constant 0 : i32
    %c0_i32_0 = arith.constant 0 : i32
    %c0_i32_1 = arith.constant 0 : i32
    return %arg0, %c0_i32, %c0_i32_0 : i32, i32, i32
  }
  func.func @transform_4(%arg0: i32) -> (i32, i32, i32) {
    %c0_i32 = arith.constant 0 : i32
    %c0_i32_0 = arith.constant 0 : i32
    %c0_i32_1 = arith.constant 0 : i32
    return %arg0, %c0_i32, %c0_i32_0 : i32, i32, i32
  }
}

module attributes {stable_mosaic.version = 11 : i64} {
  func.func @kernel(%arg0: i32, %arg1: memref<1x16x32xbf16, #tpu.memory_space<vmem>>, %arg2: memref<1x32xf32, #tpu.memory_space<vmem>>, %arg3: memref<1x32xf32, #tpu.memory_space<vmem>>, %arg4: memref<3x32x32xbf16, #tpu.memory_space<vmem>>, %arg5: memref<3x32x32xbf16, #tpu.memory_space<vmem>>, %arg6: memref<1x32xf32, #tpu.memory_space<vmem>>, %arg7: memref<1x32xf32, #tpu.memory_space<vmem>>, %arg8: memref<1x16x32xbf16, #tpu.memory_space<vmem>>, %arg9: memref<1x16x32xbf16, #tpu.memory_space<vmem>>, %arg10: memref<1x1x32xf32, #tpu.memory_space<vmem>>, %arg11: memref<1x1x32xf32, #tpu.memory_space<vmem>>, %arg12: memref<18x32xf32, #tpu.memory_space<vmem>>) attributes {dimension_semantics = [#tpu.dimension_semantics<parallel>], iteration_bounds = array<i64: 2>, scalar_prefetch = 0 : i64, scratch_operands = 1 : i64, tpu.core_type = #tpu.core_type<tc>, window_params = [{transform_indices = @transform_0, window_bounds = array<i64: 1, 16, 32>}, {pipeline_mode = #tpu.pipeline_mode<synchronous>, transform_indices = @transform_1, window_bounds = array<i64: 1, 32>}, {pipeline_mode = #tpu.pipeline_mode<synchronous>, transform_indices = @transform_2, window_bounds = array<i64: 1, 32>}, {pipeline_mode = #tpu.pipeline_mode<synchronous>, transform_indices = @transform_3, window_bounds = array<i64: 3, 32, 32>}, {pipeline_mode = #tpu.pipeline_mode<synchronous>, transform_indices = @transform_4, window_bounds = array<i64: 3, 32, 32>}, {pipeline_mode = #tpu.pipeline_mode<synchronous>, transform_indices = @transform_5, window_bounds = array<i64: 1, 32>}, {pipeline_mode = #tpu.pipeline_mode<synchronous>, transform_indices = @transform_6, window_bounds = array<i64: 1, 32>}, {transform_indices = @transform_7, window_bounds = array<i64: 1, 16, 32>}, {transform_indices = @transform_8, window_bounds = array<i64: 1, 16, 32>}, {transform_indices = @transform_9, window_bounds = array<i64: 1, 1, 32>}, {transform_indices = @transform_10, window_bounds = array<i64: 1, 1, 32>}]} {
    %c0 = arith.constant 0 : index
    %c0_0 = arith.constant 0 : index
    %c0_1 = arith.constant 0 : index
    %0 = vector.load %arg1[%c0, %c0_0, %c0_1] : memref<1x16x32xbf16, #tpu.memory_space<vmem>>, vector<1x16x32xbf16>
    %1 = vector.shape_cast %0 : vector<1x16x32xbf16> to vector<16x32xbf16>
    %2 = arith.extf %1 : vector<16x32xbf16> to vector<16x32xf32>
    %c0_2 = arith.constant 0 : index
    %c0_3 = arith.constant 0 : index
    %3 = vector.load %arg2[%c0_2, %c0_3] : memref<1x32xf32, #tpu.memory_space<vmem>>, vector<1x32xf32>
    %4 = vector.broadcast %3 : vector<1x32xf32> to vector<16x32xf32>
    %5 = arith.mulf %2, %4 : vector<16x32xf32>
    %c0_4 = arith.constant 0 : index
    %c0_5 = arith.constant 0 : index
    %6 = vector.load %arg3[%c0_4, %c0_5] : memref<1x32xf32, #tpu.memory_space<vmem>>, vector<1x32xf32>
    %7 = vector.broadcast %6 : vector<1x32xf32> to vector<16x32xf32>
    %8 = arith.addf %5, %7 : vector<16x32xf32>
    %cst = arith.constant 0.000000e+00 : f32
    %9 = vector.broadcast %cst : f32 to vector<16x32xf32>
    %10 = arith.maximumf %8, %9 : vector<16x32xf32>
    %cst_6 = arith.constant 0.707106769 : f32
    %11 = vector.broadcast %cst_6 : f32 to vector<16x32xf32>
    %12 = arith.mulf %10, %11 : vector<16x32xf32>
    %13 = arith.truncf %12 : vector<16x32xf32> to vector<16x32xbf16>
    %c0_7 = arith.constant 0 : index
    %c0_8 = arith.constant 0 : index
    %c0_9 = arith.constant 0 : index
    %14 = vector.load %arg8[%c0_7, %c0_8, %c0_9] : memref<1x16x32xbf16, #tpu.memory_space<vmem>>, vector<1x16x32xbf16>
    %15 = vector.shape_cast %14 : vector<1x16x32xbf16> to vector<16x32xbf16>
    %16 = vector.shape_cast %13 : vector<16x32xbf16> to vector<1x16x32xbf16>
    tpu.vector_store %arg8[%c0_7, %c0_8, %c0_9], %16 {strides = array<i32>} : memref<1x16x32xbf16, #tpu.memory_space<vmem>>, vector<1x16x32xbf16>,
    %cst_10 = arith.constant 0.000000e+00 : f32
    %17 = vector.broadcast %cst_10 : f32 to vector<18x32xf32>
    %c0_11 = arith.constant 0 : index
    %c0_12 = arith.constant 0 : index
    %18 = vector.load %arg12[%c0_11, %c0_12] : memref<18x32xf32, #tpu.memory_space<vmem>>, vector<18x32xf32>
    tpu.vector_store %arg12[%c0_11, %c0_12], %17 {strides = array<i32>} : memref<18x32xf32, #tpu.memory_space<vmem>>, vector<18x32xf32>,
    %c1 = arith.constant 1 : index
    %c0_13 = arith.constant 0 : index
    %19 = vector.load %arg12[%c1, %c0_13] : memref<18x32xf32, #tpu.memory_space<vmem>>, vector<16x32xf32>
    tpu.vector_store %arg12[%c1, %c0_13], %12 {strides = array<i32>} : memref<18x32xf32, #tpu.memory_space<vmem>>, vector<16x32xf32>,
    %c0_14 = arith.constant 0 : index
    %c0_15 = arith.constant 0 : index
    %20 = vector.load %arg12[%c0_14, %c0_15] : memref<18x32xf32, #tpu.memory_space<vmem>>, vector<18x32xf32>
    %21 = arith.truncf %20 : vector<18x32xf32> to vector<18x32xbf16>
    %22 = vector.extract_strided_slice %21 {offsets = [0, 0], sizes = [16, 32], strides = [1, 1]} : vector<18x32xbf16> to vector<16x32xbf16>
    %c0_16 = arith.constant 0 : index
    %c0_17 = arith.constant 0 : index
    %c0_18 = arith.constant 0 : index
    %23 = vector.load %arg4[%c0_16, %c0_17, %c0_18] : memref<3x32x32xbf16, #tpu.memory_space<vmem>>, vector<1x32x32xbf16>
    %24 = vector.shape_cast %23 : vector<1x32x32xbf16> to vector<32x32xbf16>
    %cst_19 = arith.constant dense<0.000000e+00> : vector<16x32xf32>
    %25 = tpu.matmul %22, %24, %cst_19 {dimension_numbers = #tpu.dot_dimension_numbers<[1], [0], [0], [1], [0, 0, 1, 1], [], []>} : vector<16x32xbf16>, vector<32x32xbf16>, vector<16x32xf32> -> vector<16x32xf32>
    %26 = vector.extract_strided_slice %21 {offsets = [0, 0], sizes = [16, 32], strides = [1, 1]} : vector<18x32xbf16> to vector<16x32xbf16>
    %c0_20 = arith.constant 0 : index
    %c0_21 = arith.constant 0 : index
    %c0_22 = arith.constant 0 : index
    %27 = vector.load %arg5[%c0_20, %c0_21, %c0_22] : memref<3x32x32xbf16, #tpu.memory_space<vmem>>, vector<1x32x32xbf16>
    %28 = vector.shape_cast %27 : vector<1x32x32xbf16> to vector<32x32xbf16>
    %cst_23 = arith.constant dense<0.000000e+00> : vector<16x32xf32>
    %29 = tpu.matmul %26, %28, %cst_23 {dimension_numbers = #tpu.dot_dimension_numbers<[1], [0], [0], [1], [0, 0, 1, 1], [], []>} : vector<16x32xbf16>, vector<32x32xbf16>, vector<16x32xf32> -> vector<16x32xf32>
    %30 = vector.extract_strided_slice %21 {offsets = [1, 0], sizes = [16, 32], strides = [1, 1]} : vector<18x32xbf16> to vector<16x32xbf16>
    %c1_24 = arith.constant 1 : index
    %c0_25 = arith.constant 0 : index
    %c0_26 = arith.constant 0 : index
    %31 = vector.load %arg4[%c1_24, %c0_25, %c0_26] : memref<3x32x32xbf16, #tpu.memory_space<vmem>>, vector<1x32x32xbf16>
    %32 = vector.shape_cast %31 : vector<1x32x32xbf16> to vector<32x32xbf16>
    %cst_27 = arith.constant dense<0.000000e+00> : vector<16x32xf32>
    %33 = tpu.matmul %30, %32, %cst_27 {dimension_numbers = #tpu.dot_dimension_numbers<[1], [0], [0], [1], [0, 0, 1, 1], [], []>} : vector<16x32xbf16>, vector<32x32xbf16>, vector<16x32xf32> -> vector<16x32xf32>
    %34 = arith.addf %25, %33 : vector<16x32xf32>
    %c1_28 = arith.constant 1 : index
    %c0_29 = arith.constant 0 : index
    %c0_30 = arith.constant 0 : index
    %35 = vector.load %arg5[%c1_28, %c0_29, %c0_30] : memref<3x32x32xbf16, #tpu.memory_space<vmem>>, vector<1x32x32xbf16>
    %36 = vector.shape_cast %35 : vector<1x32x32xbf16> to vector<32x32xbf16>
    %cst_31 = arith.constant dense<0.000000e+00> : vector<16x32xf32>
    %37 = tpu.matmul %30, %36, %cst_31 {dimension_numbers = #tpu.dot_dimension_numbers<[1], [0], [0], [1], [0, 0, 1, 1], [], []>} : vector<16x32xbf16>, vector<32x32xbf16>, vector<16x32xf32> -> vector<16x32xf32>
    %38 = arith.addf %29, %37 : vector<16x32xf32>
    %39 = vector.extract_strided_slice %21 {offsets = [2, 0], sizes = [16, 32], strides = [1, 1]} : vector<18x32xbf16> to vector<16x32xbf16>
    %c2 = arith.constant 2 : index
    %c0_32 = arith.constant 0 : index
    %c0_33 = arith.constant 0 : index
    %40 = vector.load %arg4[%c2, %c0_32, %c0_33] : memref<3x32x32xbf16, #tpu.memory_space<vmem>>, vector<1x32x32xbf16>
    %41 = vector.shape_cast %40 : vector<1x32x32xbf16> to vector<32x32xbf16>
    %cst_34 = arith.constant dense<0.000000e+00> : vector<16x32xf32>
    %42 = tpu.matmul %39, %41, %cst_34 {dimension_numbers = #tpu.dot_dimension_numbers<[1], [0], [0], [1], [0, 0, 1, 1], [], []>} : vector<16x32xbf16>, vector<32x32xbf16>, vector<16x32xf32> -> vector<16x32xf32>
    %43 = arith.addf %34, %42 : vector<16x32xf32>
    %c2_35 = arith.constant 2 : index
    %c0_36 = arith.constant 0 : index
    %c0_37 = arith.constant 0 : index
    %44 = vector.load %arg5[%c2_35, %c0_36, %c0_37] : memref<3x32x32xbf16, #tpu.memory_space<vmem>>, vector<1x32x32xbf16>
    %45 = vector.shape_cast %44 : vector<1x32x32xbf16> to vector<32x32xbf16>
    %cst_38 = arith.constant dense<0.000000e+00> : vector<16x32xf32>
    %46 = tpu.matmul %39, %45, %cst_38 {dimension_numbers = #tpu.dot_dimension_numbers<[1], [0], [0], [1], [0, 0, 1, 1], [], []>} : vector<16x32xbf16>, vector<32x32xbf16>, vector<16x32xf32> -> vector<16x32xf32>
    %47 = arith.addf %38, %46 : vector<16x32xf32>
    %c0_39 = arith.constant 0 : index
    %c0_40 = arith.constant 0 : index
    %48 = vector.load %arg6[%c0_39, %c0_40] : memref<1x32xf32, #tpu.memory_space<vmem>>, vector<1x32xf32>
    %49 = vector.broadcast %48 : vector<1x32xf32> to vector<16x32xf32>
    %50 = arith.addf %43, %49 : vector<16x32xf32>
    %c0_41 = arith.constant 0 : index
    %c0_42 = arith.constant 0 : index
    %51 = vector.load %arg7[%c0_41, %c0_42] : memref<1x32xf32, #tpu.memory_space<vmem>>, vector<1x32xf32>
    %52 = vector.broadcast %51 : vector<1x32xf32> to vector<16x32xf32>
    %53 = arith.addf %47, %52 : vector<16x32xf32>
    %cst_43 = arith.constant 0.000000e+00 : f32
    %54 = vector.broadcast %cst_43 : f32 to vector<16x32xf32>
    %55 = arith.subf %54, %53 : vector<16x32xf32>
    %56 = math.exp %55 : vector<16x32xf32>
    %cst_44 = arith.constant 1.000000e+00 : f32
    %57 = vector.broadcast %cst_44 : f32 to vector<16x32xf32>
    %58 = arith.addf %57, %56 : vector<16x32xf32>
    %cst_45 = arith.constant 1.000000e+00 : f32
    %59 = vector.broadcast %cst_45 : f32 to vector<16x32xf32>
    %60 = arith.divf %59, %58 : vector<16x32xf32>
    %61 = arith.mulf %50, %60 : vector<16x32xf32>
    %62 = arith.truncf %61 : vector<16x32xf32> to vector<16x32xbf16>
    %c0_46 = arith.constant 0 : index
    %c0_47 = arith.constant 0 : index
    %c0_48 = arith.constant 0 : index
    %63 = vector.load %arg9[%c0_46, %c0_47, %c0_48] : memref<1x16x32xbf16, #tpu.memory_space<vmem>>, vector<1x16x32xbf16>
    %64 = vector.shape_cast %63 : vector<1x16x32xbf16> to vector<16x32xbf16>
    %65 = vector.shape_cast %62 : vector<16x32xbf16> to vector<1x16x32xbf16>
    tpu.vector_store %arg9[%c0_46, %c0_47, %c0_48], %65 {strides = array<i32>} : memref<1x16x32xbf16, #tpu.memory_space<vmem>>, vector<1x16x32xbf16>,
    %66 = arith.extf %62 : vector<16x32xbf16> to vector<16x32xf32>
    %cst_49 = arith.constant dense<0.000000e+00> : vector<32xf32>
    %67 = vector.multi_reduction <add>, %66, %cst_49 [0] : vector<16x32xf32> to vector<32xf32>
    %68 = vector.shape_cast %67 : vector<32xf32> to vector<1x32xf32>
    %69 = vector.shape_cast %68 : vector<1x32xf32> to vector<1x1x32xf32>
    %c0_50 = arith.constant 0 : index
    %c0_51 = arith.constant 0 : index
    %c0_52 = arith.constant 0 : index
    %70 = vector.load %arg10[%c0_50, %c0_51, %c0_52] : memref<1x1x32xf32, #tpu.memory_space<vmem>>, vector<1x1x32xf32>
    tpu.vector_store %arg10[%c0_50, %c0_51, %c0_52], %69 {strides = array<i32>} : memref<1x1x32xf32, #tpu.memory_space<vmem>>, vector<1x1x32xf32>,
    %71 = arith.mulf %66, %66 : vector<16x32xf32>
    %cst_53 = arith.constant dense<0.000000e+00> : vector<32xf32>
    %72 = vector.multi_reduction <add>, %71, %cst_53 [0] : vector<16x32xf32> to vector<32xf32>
    %73 = vector.shape_cast %72 : vector<32xf32> to vector<1x32xf32>
    %74 = vector.shape_cast %73 : vector<1x32xf32> to vector<1x1x32xf32>
    %c0_54 = arith.constant 0 : index
    %c0_55 = arith.constant 0 : index
    %c0_56 = arith.constant 0 : index
    %75 = vector.load %arg11[%c0_54, %c0_55, %c0_56] : memref<1x1x32xf32, #tpu.memory_space<vmem>>, vector<1x1x32xf32>
    tpu.vector_store %arg11[%c0_54, %c0_55, %c0_56], %74 {strides = array<i32>} : memref<1x1x32xf32, #tpu.memory_space<vmem>>, vector<1x1x32xf32>,
    return
  }
  func.func @transform_0(%arg0: i32) -> (i32, i32, i32) {
    %c0_i32 = arith.constant 0 : i32
    %c0_i32_0 = arith.constant 0 : i32
    %c0_i32_1 = arith.constant 0 : i32
    return %arg0, %c0_i32, %c0_i32_0 : i32, i32, i32
  }
  func.func @transform_1(%arg0: i32) -> (i32, i32) {
    %c0_i32 = arith.constant 0 : i32
    %c0_i32_0 = arith.constant 0 : i32
    %c0_i32_1 = arith.constant 0 : i32
    return %c0_i32, %c0_i32_0 : i32, i32
  }
  func.func @transform_2(%arg0: i32) -> (i32, i32) {
    %c0_i32 = arith.constant 0 : i32
    %c0_i32_0 = arith.constant 0 : i32
    %c0_i32_1 = arith.constant 0 : i32
    return %c0_i32, %c0_i32_0 : i32, i32
  }
  func.func @transform_3(%arg0: i32) -> (i32, i32, i32) {
    %c0_i32 = arith.constant 0 : i32
    %c0_i32_0 = arith.constant 0 : i32
    %c0_i32_1 = arith.constant 0 : i32
    %c0_i32_2 = arith.constant 0 : i32
    return %c0_i32, %c0_i32_0, %c0_i32_1 : i32, i32, i32
  }
  func.func @transform_4(%arg0: i32) -> (i32, i32, i32) {
    %c0_i32 = arith.constant 0 : i32
    %c0_i32_0 = arith.constant 0 : i32
    %c0_i32_1 = arith.constant 0 : i32
    %c0_i32_2 = arith.constant 0 : i32
    return %c0_i32, %c0_i32_0, %c0_i32_1 : i32, i32, i32
  }
  func.func @transform_5(%arg0: i32) -> (i32, i32) {
    %c0_i32 = arith.constant 0 : i32
    %c0_i32_0 = arith.constant 0 : i32
    %c0_i32_1 = arith.constant 0 : i32
    return %c0_i32, %c0_i32_0 : i32, i32
  }
  func.func @transform_6(%arg0: i32) -> (i32, i32) {
    %c0_i32 = arith.constant 0 : i32
    %c0_i32_0 = arith.constant 0 : i32
    %c0_i32_1 = arith.constant 0 : i32
    return %c0_i32, %c0_i32_0 : i32, i32
  }
  func.func @transform_7(%arg0: i32) -> (i32, i32, i32) {
    %c0_i32 = arith.constant 0 : i32
    %c0_i32_0 = arith.constant 0 : i32
    %c0_i32_1 = arith.constant 0 : i32
    return %arg0, %c0_i32, %c0_i32_0 : i32, i32, i32
  }
  func.func @transform_8(%arg0: i32) -> (i32, i32, i32) {
    %c0_i32 = arith.constant 0 : i32
    %c0_i32_0 = arith.constant 0 : i32
    %c0_i32_1 = arith.constant 0 : i32
    return %arg0, %c0_i32, %c0_i32_0 : i32, i32, i32
  }
  func.func @transform_9(%arg0: i32) -> (i32, i32, i32) {
    %c0_i32 = arith.constant 0 : i32
    %c0_i32_0 = arith.constant 0 : i32
    %c0_i32_1 = arith.constant 0 : i32
    return %arg0, %c0_i32, %c0_i32_0 : i32, i32, i32
  }
  func.func @transform_10(%arg0: i32) -> (i32, i32, i32) {
    %c0_i32 = arith.constant 0 : i32
    %c0_i32_0 = arith.constant 0 : i32
    %c0_i32_1 = arith.constant 0 : i32
    return %arg0, %c0_i32, %c0_i32_0 : i32, i32, i32
  }
}

</mosaic_0001>

<bundles_post_ra>
// kernel: stacked_conv_forward.5
= control target key start
LH: loop header
LB: loop body
LE: loop exit
PB: predicated region body
PF: predicated region fallthrough
CT: control target
= control target key end

     0   :  { %9 = vsyncpa [#allocation3], 0  ;;  %s615_s0 = inlined_call_operand.vmem [shape: bf16[2,16,32], index: 0, kind: input, shape index: {}]   ;;  %s616_s1 = inlined_call_operand.vmem [shape: f32[1,32], index: 1, kind: input, shape index: {}]   ;;  %s617_s2 = inlined_call_operand.vmem [shape: f32[1,32], index: 2, kind: input, shape index: {}]   ;;  %s618_s3 = inlined_call_operand.vmem [shape: bf16[2,16,32], index: 3, kind: input, shape index: {}]   ;;  %s619_s4 = inlined_call_operand.hbm [shape: f32[2,16,32], index: 4, kind: output, shape index: {}]  }
   0x1   :  { %11 = vsyncpa [#allocation3 + $0x1], 0  ;;  %s499_s15 = smov 0   ;;  %s501_s16 = smov 0  }
   0x2   :  { %s503_s17 = smov 0   ;;  %s505_s18 = smov 0  }
   0x3 LB: > { %s520_s19 = sadd.s32 4294967295, %s469_s18   ;;  %s339_s20 = sadd.s32 4294967294, %s469_s18   ;;  %s469_s18 = sphi %s505_s18, %s625_s18   ;;  %s465_s17 = sphi %s503_s17, %s624_s17   ;;  %s461_s16 = sphi %s501_s16, %s623_s16   ;;  %s457_s15 = sphi %s499_s15, %s622_s15  }
   0x4   : > { %s524_s21 = sadd.s32 1, %s469_s18   ;;  %s118_s22 = sadd.s32 1, %s465_s17 }
   0x5   : > { %s115_s23 = ssub.s32 %s469_s18, %s524_s21  ;;  %p128_p0 = scmp.ne.s32.totalorder %s465_s17, %s461_s16 }
   0x6   : > { %p116_p1 = scmp.eq.s32.totalorder %s115_s23, 0  ;;  %p129_p2 = scmp.eq.s32.totalorder %s520_s19, 1 }
   0x7   : > { %p134_p3 = scmp.ne.s32.totalorder %s461_s16, %s457_s15  ;;  %p135_p4 = scmp.eq.s32.totalorder %s339_s20, 1 }
   0x8   : > { %s535_s24 = scalar_select %p116_p1, %s465_s17, %s118_s22  }
   0x9   : > { %p537_p5 = por %p129_p2, %p128_p0  ;;  %p541_p6 = por %p135_p4, %p134_p3 }
   0xa   : > { %p342_p7 = scmp.ge.s32.totalorder %s469_s18, 1  ;;  %p175_p8 = scmp.lt.s32.totalorder %s469_s18, 3 }
   0xc   : > { %p176_p9 = pnand %p342_p7, %p175_p8 }
   0xd   : > { %p206_p10 = scmp.lt.s32.totalorder (!%p176_p9), %s520_s19, 1  ;;  %s203_s28 = sand.u32 (!%p176_p9), 1, %s461_s16   ;;  %v348_v1 = vld [vmem:[%s616_s1] ss:$0 sm:$0xff] (!%p176_p9)  ;;  %vm248_vm0 = vcmask (!%p176_p9), 261120  }
   0xe   : > { %179 = sbr.rel (%p176_p9) target bundleno = 53 (0x35), region = 36  ;;  %s343_s9 = sshll.u32 (!%p176_p9), %s203_s28, 4  ;;  %v349_v4 = vld [vmem:[%s617_s2] ss:$0 sm:$0xff] (!%p176_p9) }
   0xf   : > { %s205_s20 = scalar_lea.vmem (!%p176_p9), [#allocation2], %s343_s9  ;;  %s357_s23 = sshll.u32 (!%p176_p9), %s520_s19, 8 }
  0x10   : > { %s265_s22 = sshll.u32 (!%p176_p9), %s205_s20, 4  ;;  %s570_s30 = scalar_lea.hbm (!%p176_p9), %s619_s4, %s357_s23  ;;  %s565_s22 = int_to_ptr.vmem [resolvable:$true] %s265_s22 }
  0x11   : > { %s574_s5 = scalar_lea.sflag (!%p176_p9), [#allocation3], %s203_s28 }
  0x15   : > { %s207_s27 = scalar_select %p206_p10, %s520_s19, 1 }
  0x16   : > { %s407_s19 = scalar_lea.vmem %s565_s22, 256 }
  0x17   : > { %s355_s29 = sshll.u32 %s207_s27, 3  ;;  %p408_p11 = scmp.ne.s32.totalorder %s565_s22, %s407_s19 }
  0x18   : > { %s210_s6 = scalar_lea.vmem %s615_s0, %s355_s29  ;;  %s215_s12 = scalar_lea.vmem %s618_s3, %s355_s29 }
  0x19   : > { %v359_v0 = vld [vmem:[%s210_s6] sm:$0xff]   ;;  %p409_p12 = pnand %p408_p11, %p537_p5  ;;  %s471_s6 = smov [#allocation2]  }
  0x1a   : > { %v360_v2 = vunpack.c.l.bf16 %v359_v0  ;;  %v361_v3 = vunpack.c.h.bf16 %v359_v0  ;;  %v363_v7 = vld [vmem:[%s215_s12] sm:$0xff]   ;;  %s411_s7 = sshll.u32 %s471_s6, 4  ;;  %s412_s7 = int_to_ptr.vmem [resolvable:$false] %s411_s7 }
  0x1b   : > { %v364_v11 = vunpack.c.l.bf16 %v363_v7  ;;  %v365_v13 = vunpack.c.h.bf16 %v363_v7  ;;  %p410_p13 = pneg %p409_p12  ;;  %s413_s8 = scalar_lea.vmem %s412_s7, 512 }
  0x1c   : > { %v227_v5 = vmul.f32 %v360_v2, %v348_v1  ;;  %v228_v6 = vmul.f32 %v361_v3, %v348_v1  ;;  %p414_p0 = scmp.lt.s32.totalorder %s565_s22, %s412_s7  ;;  %p415_p1 = scmp.lt.s32.totalorder %s413_s8, %s407_s19 }
  0x1e   : > { %v236_v8 = vadd.f32 %v349_v4, %v227_v5  ;;  %v237_v9 = vadd.f32 %v349_v4, %v228_v6  ;;  %p416_p2 = por %p415_p1, %p414_p0 }
  0x20   : > { %v238_v10 = vmax.f32 %v236_v8, 0.0  ;;  %v239_v12 = vmax.f32 %v237_v9, 0.0  ;;  %p417_p3 = pnand %p416_p2, %p410_p13 }
  0x22   : > { %v240_v14 = vmul.f32 0.70710677, %v238_v10  ;;  %v241_v15 = vmul.f32 0.70710677, %v239_v12 }
  0x24   : > { %v246_v16 = vadd.f32 %v364_v11, %v240_v14  ;;  %v247_v17 = vadd.f32 %v365_v13, %v241_v15 }
  0x26   : > { %249 = vst.msk [vmem:[%s205_s20] sm:$0xff] %vm248_vm0, %v246_v16  ;;  %250 = vst.msk [vmem:[%s205_s20 + $0x8] sm:$0xff] %vm248_vm0, %v247_v17 }
  0x27   : > { %420 = shalt.err (!%p417_p3)
}
  0x28   : > { %s421_s28 = scalar_lea.hbm %s570_s30, 256  ;;  %s425_s11 = scalar_lea.hbm %s619_s4, 512 }
  0x29   : > { %p422_p4 = scmp.ne.s32.totalorder %s570_s30, %s421_s28  ;;  %p426_p9 = scmp.lt.u32.totalorder %s570_s30, %s619_s4 }
  0x2a   : > { %p427_p10 = scmp.lt.u32.totalorder %s425_s11, %s421_s28  ;;  %p429_p12 = scmp.lt.u32.totalorder %s421_s28, %s570_s30 }
  0x2b   : > { %p423_p7 = pnand %p422_p4, %p537_p5 }
  0x2c   : > { %p428_p11 = por %p427_p10, %p426_p9 }
  0x2d   : > { %p424_p8 = pneg %p423_p7 }
  0x2e   : > { %p430_p13 = por %p429_p12, %p428_p11 }
  0x30   : > { %p431_p0 = pnand %p430_p13, %p424_p8 }
  0x32   : > { %434 = shalt.err (!%p431_p0)
}
  0x33   : > { %s472_s14 = smov 128   ;;  %s473_s20 = smov 8  }
  0x34   : > { %366 = dma.vmem_to_hbm [thread:$0]  (%p537_p5), %s565_s22, 256, %s570_s30, %s574_s5, %s472_s14, %s472_s14, %s473_s20  }
  0x35 PF: > { %p372_p1 = scmp.ge.s32.totalorder %s469_s18, 2  ;;  %s280_s23 = sand.u32 1, %s457_s15  }
  0x36   : > { %s281_s27 = scalar_lea.sflag [#allocation3], %s280_s23 }
  0x37   : > { %p369_p2 = pnand %p372_p1, %p541_p6 }
  0x39   : > { %452 = dma.done.wait (!%p369_p2), %s281_s27, 256  }
  0x3a   : > { %454 = vsyncadd (!%p369_p2), %s281_s27, 4294967040  ;;  %p14_p3 = scmp.ge.s32.totalorder %s524_s21, 4   ;;  %s622_s15 = smov %s461_s16 }
  0x3b   : > { %s623_s16 = smov %s465_s17  ;;  %s624_s17 = smov %s535_s24 }
  0x3c   : > { %s625_s18 = smov %s524_s21  ;;  %16 = sbr.rel (!%p14_p3) target bundleno = 3 (0x3), region = 74 }
  0x43   :  { %286 = vsyncpa [#allocation3], 1 }
  0x44   :  { %288 = vsyncpa [#allocation3 + $0x1], 1 }

// kernel: stacked_conv_forward.3
= control target key start
LH: loop header
LB: loop body
LE: loop exit
PB: predicated region body
PF: predicated region fallthrough
CT: control target
= control target key end

     0   :  { %s1060_s24 = smov 0   ;;  %s1172_s0 = inlined_call_operand.vmem [shape: f32[2,16,32], index: 0, kind: input, shape index: {}]   ;;  %s1173_s1 = inlined_call_operand.vmem [shape: bf16[3,32,32], index: 1, kind: input, shape index: {}]   ;;  %s1174_s2 = inlined_call_operand.vmem [shape: bf16[3,32,32], index: 2, kind: input, shape index: {}]   ;;  %s1175_s3 = inlined_call_operand.vmem [shape: f32[1,32], index: 3, kind: input, shape index: {}]   ;;  %s1176_s4 = inlined_call_operand.vmem [shape: f32[1,32], index: 4, kind: input, shape index: {}]   ;;  %s1177_s5 = inlined_call_operand.vmem [shape: bf16[2,16,32], index: 5, kind: output, shape index: {0}]   ;;  %s1178_s6 = inlined_call_operand.vmem [shape: f32[2,1,32], index: 6, kind: output, shape index: {1}]   ;;  %s1179_s7 = inlined_call_operand.vmem [shape: f32[2,1,32], index: 7, kind: output, shape index: {2}]  }
   0x1 LB: > { %s861_s25 = sadd.s32 4294967295, %s1016_s24   ;;  %p865_p0 = scmp.ge.s32.totalorder %s1016_s24, 1  ;;  %s1016_s24 = sphi %s1060_s24, %s18_s24  }
   0x2   : > { %p242_p1 = scmp.lt.s32.totalorder %s1016_s24, 3 }
   0x4   : > { %p243_p2 = pnand %p865_p0, %p242_p1 }
   0x5   : > { %v990_v0 = vld [vmem:[%s1173_s1] sm:$0xff] (!%p243_p2)   ;;  %v1018_v1 = vmov (!%p243_p2), 0.0   ;;  %v991_v2 = vld [vmem:[%s1173_s1 + $0x8] sm:$0xff] (!%p243_p2)   ;;  %v992_v3 = vld [vmem:[%s1173_s1 + $0x10] sm:$0xff] (!%p243_p2)   ;;  %vm1019_vm0 = vmmov (!%p243_p2), 0   ;;  %p280_p3 = scmp.lt.s32.totalorder (!%p243_p2), %s861_s25, 1 }
   0x6   : > { %246 = sbr.rel (%p243_p2) target bundleno = 314 (0x13a), region = 40  ;;  %940 = vmatprep.subr.bf16.mxu1 (!%p243_p2), %v1018_v1  ;;  %932 = vmatprep.subr.bf16.mxu0 (!%p243_p2), %v1018_v1  ;;  %vm299_vm1 = vcmask (!%p243_p2), 261120   ;;  %vm302_vm2 = vcmask (!%p243_p2), 254976   ;;  %v994_v4 = vld [vmem:[%s1173_s1 + $0x18] sm:$0xff] (!%p243_p2)   ;;  %v993_v7 = vld [vmem:[%s1174_s2] sm:$0xff] (!%p243_p2)   ;;  %v995_v16 = vld [vmem:[%s1174_s2 + $0x8] sm:$0xff] (!%p243_p2)  }
   0x7   : > { %941 = vmatpush3.bf16.msra.mxu1 (!%p243_p2), %v990_v0  ;;  %944 = vmatprep.mubr.msk.bf16.mxu1 (!%p243_p2), %vm1019_vm0, %v1018_v1  ;;  %300 = vst.msk [vmem:[#allocation2] sm:$0xff] (!%p243_p2), %vm299_vm1, %v1018_v1  ;;  %301 = vst.msk [vmem:[#allocation2 + $0x8] sm:$0xff] (!%p243_p2), %vm299_vm1, %v1018_v1  ;;  %vm324_vm3 = vsmask.f32 (!%p243_p2), 7424  ;;  %v996_v20 = vld [vmem:[%s1174_s2 + $0x10] sm:$0xff] (!%p243_p2)   ;;  %v997_v21 = vld [vmem:[%s1174_s2 + $0x20] sm:$0xff] (!%p243_p2)  }
   0x8   : > { %942 = vmatprep.subr.bf16.mxu1 (!%p243_p2), %v1018_v1  ;;  %936 = vmatprep.mubr.msk.bf16.mxu0 (!%p243_p2), %vm1019_vm0, %v1018_v1  ;;  %303 = vst.msk [vmem:[#allocation2 + $0x10] sm:$0x3] (!%p243_p2), %vm302_vm2, %v1018_v1  ;;  %v998_v23 = vld [vmem:[%s1174_s2 + $0x18] sm:$0xff] (!%p243_p2)   ;;  %v999_v24 = vld [vmem:[%s1174_s2 + $0x28] sm:$0xff] (!%p243_p2)   ;;  %vm566_vm4 = vcmask (!%p243_p2), 1046528   ;;  %v1000_v27 = vld [vmem:[%s1173_s1 + $0x20] sm:$0xff] (!%p243_p2)  }
   0x9   : > { %933 = vmatpush3.bf16.msra.mxu0 (!%p243_p2), %v992_v3  ;;  %v1001_v29 = vld [vmem:[%s1173_s1 + $0x28] sm:$0xff] (!%p243_p2)   ;;  %v905_v48 = vld [vmem:[%s1176_s4] ss:$0 sm:$0xff] (!%p243_p2)  ;;  %vm728_vm5 = vcmask (!%p243_p2), 257024   ;;  %vm742_vm6 = vcmask (!%p243_p2), 253952  }
   0xa   : > { %934 = vmatprep.subr.bf16.mxu0 (!%p243_p2), %v1018_v1 }
   0xb   : > { %943 = vmatpush3.bf16.msra.mxu1 (!%p243_p2), %v991_v2 }
   0xc   : > { %956 = vmatprep.subr.bf16.mxu1 (!%p243_p2), %v1018_v1 }
   0xd   : > { %s1181_s25 = smov (!%p280_p3, %s861_s25), 1  ;;  %935 = vmatpush3.bf16.msra.mxu0 %v994_v4 }
   0xe   : > { %s910_s11 = sshll.u32 %s1181_s25, 4  ;;  %948 = vmatprep.subr.bf16.mxu0 %v1018_v1  ;;  %s292_s20 = scalar_lea.vmem %s1178_s6, %s1181_s25 }
   0xf   : > { %s284_s14 = scalar_lea.vmem %s1172_s0, %s910_s11  ;;  %s295_s23 = scalar_lea.vmem %s1179_s7, %s1181_s25 }
  0x10   : > { %v297_v5 = vld [vmem:[%s284_s14] sm:$0xff]  ;;  %v298_v6 = vld [vmem:[%s284_s14 + $0x8] sm:$0xff]  ;;  %s911_s14 = sshll.u32 %s1181_s25, 3 }
  0x11   : > { %304 = vst.msk [vmem:[#allocation2 + $0x1] sm:$0xff] %vm299_vm1, %v297_v5  ;;  %305 = vst.msk [vmem:[#allocation2 + $0x9] sm:$0xff] %vm299_vm1, %v298_v6  ;;  %s289_s17 = scalar_lea.vmem %s1177_s5, %s911_s14 }
  0x18   : > { %v306_v8 = vld [vmem:[#allocation2] sm:$0xff]  ;;  %v307_v9 = vld [vmem:[#allocation2 + $0x8] sm:$0xff]  ;;  %v308_v10 = vld [vmem:[#allocation2 + $0x10] sm:$0x3] }
  0x19   : > { %v309_v11 = vpack.c.bf16 %v307_v9, %v306_v8  ;;  %v310_v12 = vpack.c.bf16 %v308_v10, %v308_v10  ;;  %v904_v9 = vld [vmem:[%s1175_s3] ss:$0 sm:$0xff] }
  0x1b   : > { %945 = vmatmul.mubr.msk.bf16.vlgmr.msra.gmra.mrb[0].mxu1 %vm299_vm1, %v309_v11  ;;  %v326_v13 = vshrl.u32 %v309_v11, 16  ;;  %v328_v14 = vshll.u32 %v309_v11, 16  ;;  %v333_v15 = vshll.u32 %v310_v12, 16  ;;  %v567_v25 = vrot.slane %v309_v11, 1 }
  0x1c   : > { %957 = vmatpush3.bf16.msra.mxu1 %v993_v7  ;;  %960 = vmatprep.mubr.msk.bf16.mxu1 %vm1019_vm0, %v1018_v1  ;;  %v568_v26 = vrot.slane %v310_v12, 1 }
  0x1d   : > { %958 = vmatprep.subr.bf16.mxu1 %v1018_v1  ;;  %v330_v17 = vrot.slane %v328_v14, 1  ;;  %v335_v18 = vrot.slane %v333_v15, 1 }
  0x1e   : > { %v569_v28 = vsel %vm566_vm4, %v567_v25, %v568_v26 }
  0x1f   : > { %v331_v19 = vor.u32 %v330_v17, %v326_v13 }
  0x20   : > { %959 = vmatpush3.bf16.msra.mxu1 %v995_v16 }
  0x21   : > { %v336_v22 = vsel %vm324_vm3, %v331_v19, %v335_v18  ;;  %972 = vmatprep.subr.bf16.mxu1 %v1018_v1 }
  0x22   : > { %937 = vmatmul.mubr.msk.bf16.vlgmr.msra.gmra.mrb[0].mxu0 %vm299_vm1, %v336_v22 }
  0x23   : > { %949 = vmatpush3.bf16.msra.mxu0 %v996_v20  ;;  %961 = vmatmul.mubr.msk.bf16.vlgmr.msra.gmra.mrb[4].mxu1 %vm299_vm1, %v309_v11 }
  0x24   : > { %973 = vmatpush3.bf16.msra.mxu1 %v997_v21  ;;  %950 = vmatprep.subr.bf16.mxu0 %v1018_v1 }
  0x25   : > { %974 = vmatprep.subr.bf16.mxu1 %v1018_v1  ;;  %952 = vmatprep.mubr.msk.bf16.mxu0 %vm1019_vm0, %v1018_v1 }
  0x26   : > { %976 = vmatprep.mubr.msk.bf16.mxu1 %vm1019_vm0, %v1018_v1 }
  0x27   : > { %951 = vmatpush3.bf16.msra.mxu0 %v998_v23 }
  0x28   : > { %975 = vmatpush3.bf16.msra.mxu1 %v999_v24  ;;  %964 = vmatprep.subr.bf16.mxu0 %v1018_v1 }
  0x2a   : > { %953 = vmatmul.mubr.msk.bf16.vlgmr.msra.gmra.mrb[4].mxu0 %vm299_vm1, %v336_v22 }
  0x2b   : > { %965 = vmatpush3.bf16.msra.mxu0 %v1000_v27  ;;  %977 = vmatmul.mubr.msk.bf16.vlgmr.msra.gmra.mrb[8].mxu1 %vm299_vm1, %v569_v28 }
  0x2c   : > { %966 = vmatprep.subr.bf16.mxu0 %v1018_v1  ;;  %968 = vmatprep.mubr.msk.bf16.mxu0 %vm1019_vm0, %v1018_v1 }
  0x2f   : > { %967 = vmatpush3.bf16.msra.mxu0 %v1001_v29 }
  0x32   : > { %969 = vmatmul.mubr.msk.bf16.vlgmr.msra.gmra.mrb[8].mxu0 %vm299_vm1, %v569_v28 }
  0xee   : > { %v441_v30 = vpop.f32.mrb[0].mxu1 }
  0xef   : > { %v946_v31 = vpop.f32.mrb[1].mxu1 }
  0xf0   : > { %v444_v32 = vpop.f32.mrb[2].mxu1 }
  0xf1   : > { %v947_v33 = vpop.f32.mrb[3].mxu1 }
  0xf5   : > { %v386_v34 = vpop.f32.mrb[0].mxu0 }
  0xf6   : > { %v442_v35 = vadd.f32 %v441_v30, %v386_v34  ;;  %v938_v36 = vpop.f32.mrb[1].mxu0  ;;  %v552_v37 = vpop.f32.mrb[4].mxu1 }
  0xf7   : > { %v389_v38 = vpop.f32.mrb[2].mxu0  ;;  %v962_v39 = vpop.f32.mrb[5].mxu1 }
  0xf8   : > { %v445_v40 = vadd.f32 %v444_v32, %v389_v38  ;;  %v939_v41 = vpop.f32.mrb[3].mxu0  ;;  %v555_v42 = vpop.f32.mrb[6].mxu1 }
  0xf9   : > { %v963_v43 = vpop.f32.mrb[7].mxu1 }
  0xfd   : > { %v499_v44 = vpop.f32.mrb[4].mxu0 }
  0xfe   : > { %v553_v45 = vadd.f32 %v552_v37, %v499_v44  ;;  %v954_v46 = vpop.f32.mrb[5].mxu0  ;;  %v679_v47 = vpop.f32.mrb[8].mxu1 }
  0xff   : > { %v502_v49 = vpop.f32.mrb[6].mxu0  ;;  %v978_v50 = vpop.f32.mrb[9].mxu1 }
 0x100   : > { %v686_v51 = vadd.f32 %v679_v47, %v553_v45  ;;  %v556_v52 = vadd.f32 %v555_v42, %v502_v49  ;;  %v955_v53 = vpop.f32.mrb[7].mxu0  ;;  %v682_v54 = vpop.f32.mrb[10].mxu1 }
 0x101   : > { %v979_v55 = vpop.f32.mrb[11].mxu1 }
 0x102   : > { %v704_v56 = vadd.f32 %v905_v48, %v686_v51  ;;  %v687_v57 = vadd.f32 %v682_v54, %v556_v52 }
 0x104   : > { %v706_v58 = vsub.f32 0.0, %v704_v56  ;;  %v705_v59 = vadd.f32 %v905_v48, %v687_v57 }
 0x105   : > { %v619_v60 = vpop.f32.mrb[8].mxu0 }
 0x106   : > { %v708_v61 = vmul.f32 1.442695, %v706_v58  ;;  %v707_v62 = vsub.f32 0.0, %v705_v59  ;;  %v626_v63 = vadd.f32 %v619_v60, %v442_v35  ;;  %v970_v0 = vpop.f32.mrb[9].mxu0 }
 0x107   : > { %v622_v1 = vpop.f32.mrb[10].mxu0 }
 0x108   : > { %1002 = vpow2.f32 %v708_v61  ;;  %v710_v2 = vmul.f32 1.442695, %v707_v62  ;;  %v627_v3 = vadd.f32 %v622_v1, %v445_v40  ;;  %v971_v4 = vpop.f32.mrb[11].mxu0  ;;  %v695_v10 = vadd.f32 %v904_v9, %v626_v63 }
 0x10a   : > { %1004 = vpow2.f32 %v710_v2  ;;  %v696_v13 = vadd.f32 %v904_v9, %v627_v3 }
 0x112   : > { %v1003_v5 = vpop.eup %1002 }
 0x113   : > { %v712_v6 = vadd.f32 1.0, %v1003_v5 }
 0x114   : > { %v1005_v7 = vpop.eup %1004 }
 0x115   : > { %1006 = vrcp.f32 %v712_v6  ;;  %v713_v8 = vadd.f32 1.0, %v1005_v7 }
 0x117   : > { %1008 = vrcp.f32 %v713_v8 }
 0x11f   : > { %v1007_v11 = vpop.eup %1006 }
 0x120   : > { %v718_v12 = vmul.f32 %v1007_v11, %v695_v10 }
 0x121   : > { %v1009_v14 = vpop.eup %1008 }
 0x122   : > { %v912_v15 = vpack.c.bf16 %v718_v12, %v718_v12  ;;  %v719_v16 = vmul.f32 %v1009_v14, %v696_v13 }
 0x124   : > { %729 = vst.msk [vmem:[%s289_s17] sm:$0xf] %vm728_vm5, %v912_v15  ;;  %v720_v17 = vpack.c.bf16 %v719_v16, %v718_v12  ;;  %v913_v18 = vpack.c.bf16 %v719_v16, %v719_v16 }
 0x126   : > { %730 = vst.msk [vmem:[%s289_s17 + $0x4] sm:$0xf] %vm728_vm5, %v913_v18  ;;  %v731_v19 = vunpack.c.l.bf16 %v720_v17  ;;  %v732_v20 = vunpack.c.h.bf16 %v720_v17 }
 0x128   : > { %v733_v21 = vsel %vm299_vm1, %v731_v19, 0.0  ;;  %v734_v22 = vsel %vm299_vm1, %v732_v20, 0.0  ;;  %v744_v23 = vmul.f32 %v731_v19, %v731_v19  ;;  %v745_v24 = vmul.f32 %v732_v20, %v732_v20 }
 0x129   : > { %v735_v25 = vadd.f32 %v734_v22, %v733_v21 }
 0x12a   : > { %v746_v26 = vsel %vm299_vm1, %v744_v23, 0.0  ;;  %v747_v27 = vsel %vm299_vm1, %v745_v24, 0.0 }
 0x12b   : > { %v736_v28 = vrot.slane %v735_v25, 4  ;;  %v748_v29 = vadd.f32 %v747_v27, %v746_v26 }
 0x12d   : > { %v737_v30 = vadd.f32 %v736_v28, %v735_v25  ;;  %v749_v31 = vrot.slane %v748_v29, 4 }
 0x12f   : > { %v738_v32 = vrot.slane %v737_v30, 2  ;;  %v750_v33 = vadd.f32 %v749_v31, %v748_v29 }
 0x131   : > { %v739_v34 = vadd.f32 %v738_v32, %v737_v30  ;;  %v751_v35 = vrot.slane %v750_v33, 2 }
 0x133   : > { %v740_v36 = vrot.slane %v739_v34, 1  ;;  %v752_v37 = vadd.f32 %v751_v35, %v750_v33 }
 0x135   : > { %v741_v38 = vadd.f32 %v740_v36, %v739_v34  ;;  %v753_v39 = vrot.slane %v752_v37, 1 }
 0x137   : > { %743 = vst.msk [vmem:[%s292_s20] sm:$0x1] %vm742_vm6, %v741_v38  ;;  %v754_v40 = vadd.f32 %v753_v39, %v752_v37 }
 0x139   : > { %755 = vst.msk [vmem:[%s295_s23] sm:$0x1] %vm742_vm6, %v754_v40 }
 0x13a PF: > { %s18_s24 = sadd.s32 1, %s1016_s24  }
 0x13b   : > { %p15_p4 = scmp.ge.s32.totalorder %s18_s24, 4  }
 0x13d   :  { %17 = sbr.rel (!%p15_p4) target bundleno = 1 (0x1), region = 98 }

// kernel: stacked_conv_forward.4
= control target key start
LH: loop header
LB: loop body
LE: loop exit
PB: predicated region body
PF: predicated region fallthrough
CT: control target
= control target key end

     0   :  { %s1248_s13 = smov 0   ;;  %s1377_s0 = inlined_call_operand.vmem [shape: bf16[2,16,32], index: 0, kind: input, shape index: {}]   ;;  %s1378_s1 = inlined_call_operand.vmem [shape: f32[1,32], index: 1, kind: input, shape index: {}]   ;;  %s1379_s2 = inlined_call_operand.vmem [shape: f32[1,32], index: 2, kind: input, shape index: {}]   ;;  %s1380_s3 = inlined_call_operand.vmem [shape: bf16[3,32,32], index: 3, kind: input, shape index: {}]   ;;  %s1381_s4 = inlined_call_operand.vmem [shape: bf16[3,32,32], index: 4, kind: input, shape index: {}]   ;;  %s1382_s5 = inlined_call_operand.vmem [shape: f32[1,32], index: 5, kind: input, shape index: {}]   ;;  %s1383_s6 = inlined_call_operand.vmem [shape: f32[1,32], index: 6, kind: input, shape index: {}]   ;;  %s1384_s7 = inlined_call_operand.vmem [shape: bf16[2,16,32], index: 7, kind: output, shape index: {0}]   ;;  %s1385_s8 = inlined_call_operand.vmem [shape: bf16[2,16,32], index: 8, kind: output, shape index: {1}]   ;;  %s1386_s9 = inlined_call_operand.vmem [shape: f32[2,1,32], index: 9, kind: output, shape index: {2}]   ;;  %s1387_s10 = inlined_call_operand.vmem [shape: f32[2,1,32], index: 10, kind: output, shape index: {3}]  }
   0x1 LB: > { %s1021_s14 = sadd.s32 4294967295, %s1189_s13   ;;  %p1025_p0 = scmp.ge.s32.totalorder %s1189_s13, 1  ;;  %s1189_s13 = sphi %s1248_s13, %s21_s13  }
   0x2   : > { %p319_p1 = scmp.lt.s32.totalorder %s1189_s13, 3 }
   0x4   : > { %p320_p2 = pnand %p1025_p0, %p319_p1 }
   0x5   : > { %v1163_v0 = vld [vmem:[%s1380_s3] sm:$0xff] (!%p320_p2)   ;;  %v1191_v1 = vmov (!%p320_p2), 0.0   ;;  %v1164_v2 = vld [vmem:[%s1380_s3 + $0x8] sm:$0xff] (!%p320_p2)   ;;  %v1165_v3 = vld [vmem:[%s1380_s3 + $0x10] sm:$0xff] (!%p320_p2)   ;;  %vm1192_vm0 = vmmov (!%p320_p2), 0   ;;  %p368_p3 = scmp.lt.s32.totalorder (!%p320_p2), %s1021_s14, 1 }
   0x6   : > { %323 = sbr.rel (%p320_p2) target bundleno = 324 (0x144), region = 48  ;;  %1113 = vmatprep.subr.bf16.mxu1 (!%p320_p2), %v1191_v1  ;;  %1105 = vmatprep.subr.bf16.mxu0 (!%p320_p2), %v1191_v1  ;;  %vm427_vm1 = vcmask (!%p320_p2), 261120   ;;  %vm430_vm2 = vcmask (!%p320_p2), 254976   ;;  %v1167_v4 = vld [vmem:[%s1380_s3 + $0x18] sm:$0xff] (!%p320_p2)   ;;  %v1032_v6 = vld [vmem:[%s1378_s1] ss:$0 sm:$0xff] (!%p320_p2) }
   0x7   : > { %1114 = vmatpush3.bf16.msra.mxu1 (!%p320_p2), %v1163_v0  ;;  %1117 = vmatprep.mubr.msk.bf16.mxu1 (!%p320_p2), %vm1192_vm0, %v1191_v1  ;;  %428 = vst.msk [vmem:[#allocation2] sm:$0xff] (!%p320_p2), %vm427_vm1, %v1191_v1  ;;  %429 = vst.msk [vmem:[#allocation2 + $0x8] sm:$0xff] (!%p320_p2), %vm427_vm1, %v1191_v1  ;;  %v1033_v9 = vld [vmem:[%s1379_s2] ss:$0 sm:$0xff] (!%p320_p2)  ;;  %v1168_v27 = vld [vmem:[%s1381_s4 + $0x8] sm:$0xff] (!%p320_p2)   ;;  %vm694_vm4 = vcmask (!%p320_p2), 1046528  }
   0x8   : > { %1115 = vmatprep.subr.bf16.mxu1 (!%p320_p2), %v1191_v1  ;;  %1109 = vmatprep.mubr.msk.bf16.mxu0 (!%p320_p2), %vm1192_vm0, %v1191_v1  ;;  %431 = vst.msk [vmem:[#allocation2 + $0x10] sm:$0x3] (!%p320_p2), %vm430_vm2, %v1191_v1  ;;  %v1166_v18 = vld [vmem:[%s1381_s4] sm:$0xff] (!%p320_p2)   ;;  %vm452_vm3 = vsmask.f32 (!%p320_p2), 7424  ;;  %v1169_v31 = vld [vmem:[%s1381_s4 + $0x10] sm:$0xff] (!%p320_p2)  }
   0x9   : > { %1106 = vmatpush3.bf16.msra.mxu0 (!%p320_p2), %v1165_v3  ;;  %v1170_v32 = vld [vmem:[%s1381_s4 + $0x20] sm:$0xff] (!%p320_p2)   ;;  %v1171_v34 = vld [vmem:[%s1381_s4 + $0x18] sm:$0xff] (!%p320_p2)   ;;  %v1172_v35 = vld [vmem:[%s1381_s4 + $0x28] sm:$0xff] (!%p320_p2)   ;;  %vm424_vm5 = vcmask (!%p320_p2), 257024   ;;  %vm869_vm6 = vcmask (!%p320_p2), 253952  }
   0xa   : > { %1107 = vmatprep.subr.bf16.mxu0 (!%p320_p2), %v1191_v1  ;;  %v1173_v38 = vld [vmem:[%s1380_s3 + $0x20] sm:$0xff] (!%p320_p2)   ;;  %v1174_v40 = vld [vmem:[%s1380_s3 + $0x28] sm:$0xff] (!%p320_p2)  }
   0xb   : > { %1116 = vmatpush3.bf16.msra.mxu1 (!%p320_p2), %v1164_v2  ;;  %v1071_v61 = vld [vmem:[%s1383_s6] ss:$0 sm:$0xff] (!%p320_p2) }
   0xc   : > { %1129 = vmatprep.subr.bf16.mxu1 (!%p320_p2), %v1191_v1 }
   0xd   : > { %s1389_s14 = smov (!%p368_p3, %s1021_s14), 1  ;;  %1108 = vmatpush3.bf16.msra.mxu0 %v1167_v4 }
   0xe   : > { %s1284_s23 = sshll.u32 %s1389_s14, 3  ;;  %1121 = vmatprep.subr.bf16.mxu0 %v1191_v1  ;;  %s385_s24 = scalar_lea.vmem %s1386_s9, %s1389_s14 }
   0xf   : > { %s372_s26 = scalar_lea.vmem %s1377_s0, %s1284_s23  ;;  %s377_s12 = scalar_lea.vmem %s1384_s7, %s1284_s23 }
  0x10   : > { %v1084_v5 = vld [vmem:[%s372_s26] sm:$0xff]   ;;  %s382_s21 = scalar_lea.vmem %s1385_s8, %s1284_s23  ;;  %s388_s27 = scalar_lea.vmem %s1387_s10, %s1389_s14 }
  0x11   : > { %v1085_v7 = vunpack.c.l.bf16 %v1084_v5  ;;  %v1086_v8 = vunpack.c.h.bf16 %v1084_v5 }
  0x13   : > { %v401_v10 = vmul.f32 %v1085_v7, %v1032_v6  ;;  %v402_v11 = vmul.f32 %v1086_v8, %v1032_v6 }
  0x15   : > { %v410_v12 = vadd.f32 %v1033_v9, %v401_v10  ;;  %v411_v13 = vadd.f32 %v1033_v9, %v402_v11 }
  0x17   : > { %v412_v14 = vmax.f32 %v410_v12, 0.0  ;;  %v413_v15 = vmax.f32 %v411_v13, 0.0 }
  0x19   : > { %v414_v16 = vmul.f32 0.70710677, %v412_v14  ;;  %v415_v17 = vmul.f32 0.70710677, %v413_v15 }
  0x1b   : > { %432 = vst.msk [vmem:[#allocation2 + $0x1] sm:$0xff] %vm427_vm1, %v414_v16  ;;  %433 = vst.msk [vmem:[#allocation2 + $0x9] sm:$0xff] %vm427_vm1, %v415_v17  ;;  %v1079_v41 = vpack.c.bf16 %v414_v16, %v414_v16  ;;  %v1080_v42 = vpack.c.bf16 %v415_v17, %v415_v17 }
  0x1d   : > { %425 = vst.msk [vmem:[%s377_s12] sm:$0xf] %vm424_vm5, %v1079_v41  ;;  %426 = vst.msk [vmem:[%s377_s12 + $0x4] sm:$0xf] %vm424_vm5, %v1080_v42 }
  0x22   : > { %v434_v19 = vld [vmem:[#allocation2] sm:$0xff]  ;;  %v435_v20 = vld [vmem:[#allocation2 + $0x8] sm:$0xff]  ;;  %v436_v21 = vld [vmem:[#allocation2 + $0x10] sm:$0x3] }
  0x23   : > { %v437_v22 = vpack.c.bf16 %v435_v20, %v434_v19  ;;  %v438_v23 = vpack.c.bf16 %v436_v21, %v436_v21 }
  0x25   : > { %1118 = vmatmul.mubr.msk.bf16.vlgmr.msra.gmra.mrb[0].mxu1 %vm427_vm1, %v437_v22  ;;  %v454_v24 = vshrl.u32 %v437_v22, 16  ;;  %v456_v25 = vshll.u32 %v437_v22, 16  ;;  %v461_v26 = vshll.u32 %v438_v23, 16  ;;  %v695_v36 = vrot.slane %v437_v22, 1 }
  0x26   : > { %1130 = vmatpush3.bf16.msra.mxu1 %v1166_v18  ;;  %1133 = vmatprep.mubr.msk.bf16.mxu1 %vm1192_vm0, %v1191_v1  ;;  %v696_v37 = vrot.slane %v438_v23, 1 }
  0x27   : > { %1131 = vmatprep.subr.bf16.mxu1 %v1191_v1  ;;  %v458_v28 = vrot.slane %v456_v25, 1  ;;  %v463_v29 = vrot.slane %v461_v26, 1 }
  0x28   : > { %v697_v39 = vsel %vm694_vm4, %v695_v36, %v696_v37 }
  0x29   : > { %v459_v30 = vor.u32 %v458_v28, %v454_v24 }
  0x2a   : > { %1132 = vmatpush3.bf16.msra.mxu1 %v1168_v27 }
  0x2b   : > { %v464_v33 = vsel %vm452_vm3, %v459_v30, %v463_v29  ;;  %1145 = vmatprep.subr.bf16.mxu1 %v1191_v1 }
  0x2c   : > { %1110 = vmatmul.mubr.msk.bf16.vlgmr.msra.gmra.mrb[0].mxu0 %vm427_vm1, %v464_v33 }
  0x2d   : > { %1122 = vmatpush3.bf16.msra.mxu0 %v1169_v31  ;;  %1134 = vmatmul.mubr.msk.bf16.vlgmr.msra.gmra.mrb[4].mxu1 %vm427_vm1, %v437_v22  ;;  %v1070_v22 = vld [vmem:[%s1382_s5] ss:$0 sm:$0xff] }
  0x2e   : > { %1146 = vmatpush3.bf16.msra.mxu1 %v1170_v32  ;;  %1123 = vmatprep.subr.bf16.mxu0 %v1191_v1 }
  0x2f   : > { %1147 = vmatprep.subr.bf16.mxu1 %v1191_v1  ;;  %1125 = vmatprep.mubr.msk.bf16.mxu0 %vm1192_vm0, %v1191_v1 }
  0x30   : > { %1149 = vmatprep.mubr.msk.bf16.mxu1 %vm1192_vm0, %v1191_v1 }
  0x31   : > { %1124 = vmatpush3.bf16.msra.mxu0 %v1171_v34 }
  0x32   : > { %1148 = vmatpush3.bf16.msra.mxu1 %v1172_v35  ;;  %1137 = vmatprep.subr.bf16.mxu0 %v1191_v1 }
  0x34   : > { %1126 = vmatmul.mubr.msk.bf16.vlgmr.msra.gmra.mrb[4].mxu0 %vm427_vm1, %v464_v33 }
  0x35   : > { %1138 = vmatpush3.bf16.msra.mxu0 %v1173_v38  ;;  %1150 = vmatmul.mubr.msk.bf16.vlgmr.msra.gmra.mrb[8].mxu1 %vm427_vm1, %v697_v39 }
  0x36   : > { %1139 = vmatprep.subr.bf16.mxu0 %v1191_v1  ;;  %1141 = vmatprep.mubr.msk.bf16.mxu0 %vm1192_vm0, %v1191_v1 }
  0x39   : > { %1140 = vmatpush3.bf16.msra.mxu0 %v1174_v40 }
  0x3c   : > { %1142 = vmatmul.mubr.msk.bf16.vlgmr.msra.gmra.mrb[8].mxu0 %vm427_vm1, %v697_v39 }
  0xf8   : > { %v569_v43 = vpop.f32.mrb[0].mxu1 }
  0xf9   : > { %v1119_v44 = vpop.f32.mrb[1].mxu1 }
  0xfa   : > { %v572_v45 = vpop.f32.mrb[2].mxu1 }
  0xfb   : > { %v1120_v46 = vpop.f32.mrb[3].mxu1 }
  0xff   : > { %v514_v47 = vpop.f32.mrb[0].mxu0 }
 0x100   : > { %v570_v48 = vadd.f32 %v569_v43, %v514_v47  ;;  %v1111_v49 = vpop.f32.mrb[1].mxu0  ;;  %v680_v50 = vpop.f32.mrb[4].mxu1 }
 0x101   : > { %v517_v51 = vpop.f32.mrb[2].mxu0  ;;  %v1135_v52 = vpop.f32.mrb[5].mxu1 }
 0x102   : > { %v573_v53 = vadd.f32 %v572_v45, %v517_v51  ;;  %v1112_v54 = vpop.f32.mrb[3].mxu0  ;;  %v683_v55 = vpop.f32.mrb[6].mxu1 }
 0x103   : > { %v1136_v56 = vpop.f32.mrb[7].mxu1 }
 0x107   : > { %v627_v57 = vpop.f32.mrb[4].mxu0 }
 0x108   : > { %v681_v58 = vadd.f32 %v680_v50, %v627_v57  ;;  %v1127_v59 = vpop.f32.mrb[5].mxu0  ;;  %v807_v60 = vpop.f32.mrb[8].mxu1 }
 0x109   : > { %v630_v62 = vpop.f32.mrb[6].mxu0  ;;  %v1151_v63 = vpop.f32.mrb[9].mxu1 }
 0x10a   : > { %v814_v0 = vadd.f32 %v807_v60, %v681_v58  ;;  %v684_v1 = vadd.f32 %v683_v55, %v630_v62  ;;  %v1128_v2 = vpop.f32.mrb[7].mxu0  ;;  %v810_v3 = vpop.f32.mrb[10].mxu1 }
 0x10b   : > { %v1152_v4 = vpop.f32.mrb[11].mxu1 }
 0x10c   : > { %v832_v5 = vadd.f32 %v1071_v61, %v814_v0  ;;  %v815_v6 = vadd.f32 %v810_v3, %v684_v1 }
 0x10e   : > { %v834_v7 = vsub.f32 0.0, %v832_v5  ;;  %v833_v8 = vadd.f32 %v1071_v61, %v815_v6 }
 0x10f   : > { %v747_v9 = vpop.f32.mrb[8].mxu0 }
 0x110   : > { %v836_v10 = vmul.f32 1.442695, %v834_v7  ;;  %v835_v11 = vsub.f32 0.0, %v833_v8  ;;  %v754_v12 = vadd.f32 %v747_v9, %v570_v48  ;;  %v1143_v13 = vpop.f32.mrb[9].mxu0 }
 0x111   : > { %v750_v14 = vpop.f32.mrb[10].mxu0 }
 0x112   : > { %1175 = vpow2.f32 %v836_v10  ;;  %v838_v15 = vmul.f32 1.442695, %v835_v11  ;;  %v755_v16 = vadd.f32 %v750_v14, %v573_v53  ;;  %v1144_v17 = vpop.f32.mrb[11].mxu0  ;;  %v823_v23 = vadd.f32 %v1070_v22, %v754_v12 }
 0x114   : > { %1177 = vpow2.f32 %v838_v15  ;;  %v824_v26 = vadd.f32 %v1070_v22, %v755_v16 }
 0x11c   : > { %v1176_v18 = vpop.eup %1175 }
 0x11d   : > { %v840_v19 = vadd.f32 1.0, %v1176_v18 }
 0x11e   : > { %v1178_v20 = vpop.eup %1177 }
 0x11f   : > { %1179 = vrcp.f32 %v840_v19  ;;  %v841_v21 = vadd.f32 1.0, %v1178_v20 }
 0x121   : > { %1181 = vrcp.f32 %v841_v21 }
 0x129   : > { %v1180_v24 = vpop.eup %1179 }
 0x12a   : > { %v846_v25 = vmul.f32 %v1180_v24, %v823_v23 }
 0x12b   : > { %v1182_v27 = vpop.eup %1181 }
 0x12c   : > { %v1081_v28 = vpack.c.bf16 %v846_v25, %v846_v25  ;;  %v847_v29 = vmul.f32 %v1182_v27, %v824_v26 }
 0x12e   : > { %856 = vst.msk [vmem:[%s382_s21] sm:$0xf] %vm424_vm5, %v1081_v28  ;;  %v848_v30 = vpack.c.bf16 %v847_v29, %v846_v25  ;;  %v1082_v31 = vpack.c.bf16 %v847_v29, %v847_v29 }
 0x130   : > { %857 = vst.msk [vmem:[%s382_s21 + $0x4] sm:$0xf] %vm424_vm5, %v1082_v31  ;;  %v858_v32 = vunpack.c.l.bf16 %v848_v30  ;;  %v859_v33 = vunpack.c.h.bf16 %v848_v30 }
 0x132   : > { %v860_v34 = vsel %vm427_vm1, %v858_v32, 0.0  ;;  %v861_v35 = vsel %vm427_vm1, %v859_v33, 0.0  ;;  %v871_v36 = vmul.f32 %v858_v32, %v858_v32  ;;  %v872_v37 = vmul.f32 %v859_v33, %v859_v33 }
 0x133   : > { %v862_v38 = vadd.f32 %v861_v35, %v860_v34 }
 0x134   : > { %v873_v39 = vsel %vm427_vm1, %v871_v36, 0.0  ;;  %v874_v40 = vsel %vm427_vm1, %v872_v37, 0.0 }
 0x135   : > { %v863_v41 = vrot.slane %v862_v38, 4  ;;  %v875_v42 = vadd.f32 %v874_v40, %v873_v39 }
 0x137   : > { %v864_v43 = vadd.f32 %v863_v41, %v862_v38  ;;  %v876_v44 = vrot.slane %v875_v42, 4 }
 0x139   : > { %v865_v45 = vrot.slane %v864_v43, 2  ;;  %v877_v46 = vadd.f32 %v876_v44, %v875_v42 }
 0x13b   : > { %v866_v47 = vadd.f32 %v865_v45, %v864_v43  ;;  %v878_v48 = vrot.slane %v877_v46, 2 }
 0x13d   : > { %v867_v49 = vrot.slane %v866_v47, 1  ;;  %v879_v50 = vadd.f32 %v878_v48, %v877_v46 }
 0x13f   : > { %v868_v51 = vadd.f32 %v867_v49, %v866_v47  ;;  %v880_v52 = vrot.slane %v879_v50, 1 }
 0x141   : > { %870 = vst.msk [vmem:[%s385_s24] sm:$0x1] %vm869_vm6, %v868_v51  ;;  %v881_v53 = vadd.f32 %v880_v52, %v879_v50 }
 0x143   : > { %882 = vst.msk [vmem:[%s388_s27] sm:$0x1] %vm869_vm6, %v881_v53 }
 0x144 PF: > { %s21_s13 = sadd.s32 1, %s1189_s13  }
 0x145   : > { %p18_p4 = scmp.ge.s32.totalorder %s21_s13, 4  }
 0x147   :  { %20 = sbr.rel (!%p18_p4) target bundleno = 1 (0x1), region = 118 }

</bundles_post_ra>
